<compile_context>
chip_gen: v5e
topology: v5e:2x2
jax: 0.10.0
libtpu: 0.0.40
codegen_flags: <defaults>
</compile_context>

<pallas_src>
import math
import functools

import jax
import jax.numpy as jnp
from jax import lax
from jax.experimental import pallas as pl
from jax.experimental.pallas import tpu as pltpu


def _round_up(a, b):
    return ((a + b - 1) // b) * b


def _mi_kernel(x_ref, y_ref, ent_ref, hist_ref, *,
               sigma, vmin, vmax, num_bins, ips):
    # x_ref / y_ref : (1, ips, m_tile) f32
    # ent_ref       : (1, ips, 3)      f32   [ent_x, ent_y, ent_joint] per item
    # hist_ref      : (ips*nb, ips*nb) f32   VMEM accumulator (persistent)
    nb = num_bins
    m_tile = x_ref.shape[-1]
    chunk = pl.program_id(1)
    n_chunks = pl.num_programs(1)

    @pl.when(chunk == 0)
    def _init():
        hist_ref[...] = jnp.zeros_like(hist_ref)

    neg_inv_two_sigma2 = -1.0 / (2.0 * sigma * sigma)
    bin_step = (vmax - vmin) / (num_bins - 1)

    x = x_ref[0]                                   # (ips, m_tile)
    y = y_ref[0]

    # Bins generated in-kernel (no (64,1) bins input / extra BlockSpec).
    b_idx = lax.broadcasted_iota(jnp.int32, (ips, nb, m_tile), 1)
    bins = vmin + b_idx.astype(jnp.float32) * bin_step         # (ips, nb, m_tile)

    dx = x[:, None, :] - bins
    dy = y[:, None, :] - bins
    # NOTE: the 1/(sqrt(2*pi)*sigma) Parzen normaliser is dropped on purpose —
    # it cancels exactly in p_joint = hist / sum(hist).
    win_x = jnp.exp(dx * dx * neg_inv_two_sigma2)              # (ips, nb, m_tile)
    win_y = jnp.exp(dy * dy * neg_inv_two_sigma2)

    # bf16 operands for the MXU, f32 accumulation.
    wx = win_x.reshape(ips * nb, m_tile).astype(jnp.bfloat16)
    wy = win_y.reshape(ips * nb, m_tile).astype(jnp.bfloat16)

    # One wide matmul for all packed items; hist[i*nb+b1, i*nb+b2] is the
    # per-item joint histogram block.
    hist_ref[...] += lax.dot_general(
        wx, wy, (((1,), (1,)), ((), ())),
        preferred_element_type=jnp.float32)

    @pl.when(chunk == n_chunks - 1)
    def _finalize():
        row_idx = lax.broadcasted_iota(jnp.int32, (ips, 3), 0)
        col_idx = lax.broadcasted_iota(jnp.int32, (ips, 3), 1)
        out = jnp.zeros((ips, 3), jnp.float32)
        for i in range(ips):                                   # static unroll
            h = hist_ref[i * nb:(i + 1) * nb, i * nb:(i + 1) * nb]   # (nb, nb)
            inv = pl.reciprocal(jnp.sum(h, keepdims=True) + 1e-5,
                                approx=True)                   # (1, 1)
            p = h * inv                                        # (nb, nb)
            p_x = jnp.sum(p, axis=1, keepdims=True)            # (nb, 1)  (torch dim=2)
            p_y = jnp.sum(p, axis=0, keepdims=True)            # (1, nb)  (torch dim=1)
            e_x = -jnp.sum(p_x * jnp.log(p_x + 1e-5))
            e_y = -jnp.sum(p_y * jnp.log(p_y + 1e-5))
            e_j = -jnp.sum(p * jnp.log(p + 1e-5))
            vals = jnp.where(col_idx == 0, e_x,
                             jnp.where(col_idx == 1, e_y, e_j))  # (ips, 3)
            out = jnp.where(row_idx == i, vals, out)
        ent_ref[0] = out


def mi_loss_gaussian(x, y, key, *, vmin=0.0, vmax=1.0, num_bins=64,
                     sample_ratio=0.1, normalised=True,
                     items_per_step=4, max_m_tile=2048):
    """x, y: (N, 1, *sizes) float arrays. Returns scalar (N)MI loss."""
    N = x.shape[0]
    x_flat = x.reshape(N, -1).astype(jnp.float32)
    y_flat = y.reshape(N, -1).astype(jnp.float32)
    numel = x_flat.shape[-1]

    if sample_ratio < 1.0:
        # Random subsampling (matches torch.randperm()[:idx_th] semantics; RNG differs).
        # TODO(synk): for very large volumes, push this gather into the kernel via
        # scalar-prefetched sample offsets to avoid an extra HBM read+write.
        idx_th = int(sample_ratio * numel)
        idx_choice = jax.random.permutation(key, numel)[:idx_th]
        x_flat = x_flat[:, idx_choice]
        y_flat = y_flat[:, idx_choice]

    M = x_flat.shape[-1]

    bin_width = (vmax - vmin) / num_bins
    sigma = bin_width / (2.0 * math.sqrt(2.0 * math.log(2.0)))

    # Pack `ips` batch items per grid step (fills the MXU width, amortizes
    # per-step pipeline overhead); pad N up to a multiple of ips.
    ips = max(1, min(items_per_step, N))
    n_groups = -(-N // ips)
    N_pad = n_groups * ips

    # Tile M; pad M up to a multiple of the (lane-aligned) tile.
    m_tile = min(max_m_tile, _round_up(M, 128))
    M_pad = _round_up(M, m_tile)
    n_chunks = M_pad // m_tile

    # Out-of-range sentinel: its Gaussian window underflows to exactly 0, so
    # padded samples / padded batch rows contribute nothing to the histogram.
    sentinel = vmax + 1000.0 * (vmax - vmin) + 1000.0

    def _pad(a):
        a = jnp.pad(a, ((0, N_pad - N), (0, M_pad - M)),
                    constant_values=sentinel)
        return a.reshape(n_groups, ips, M_pad)

    xp = _pad(x_flat)
    yp = _pad(y_flat)

    kernel = functools.partial(_mi_kernel, sigma=sigma, vmin=vmin, vmax=vmax,
                               num_bins=num_bins, ips=ips)

    ents = pl.pallas_call(
        kernel,
        out_shape=jax.ShapeDtypeStruct((n_groups, ips, 3), jnp.float32),
        grid_spec=pltpu.PrefetchScalarGridSpec(
            num_scalar_prefetch=0,
            grid=(n_groups, n_chunks),
            in_specs=[
                pl.BlockSpec((1, ips, m_tile), lambda g, c: (g, 0, c)),  # x tile
                pl.BlockSpec((1, ips, m_tile), lambda g, c: (g, 0, c)),  # y tile
            ],
            out_specs=pl.BlockSpec((1, ips, 3), lambda g, c: (g, 0, 0)),
            scratch_shapes=[
                pltpu.VMEM((ips * num_bins, ips * num_bins), jnp.float32),
            ],
        ),
        compiler_params=pltpu.CompilerParams(
            dimension_semantics=("parallel", "arbitrary"),
            vmem_limit_bytes=32 * 1024 * 1024,
        ),
    )(xp, yp)

    ents = ents.reshape(N_pad, 3)[:N]          # drop padded batch items
    ent_x, ent_y, ent_j = ents[:, 0], ents[:, 1], ents[:, 2]

    if normalised:
        return 2.0 - jnp.mean((ent_x + ent_y) / ent_j)
    return -jnp.mean(ent_x + ent_y - ent_j)


def _reference_mi(x_flat, y_flat, *, vmin, vmax, num_bins, normalised):
    """Pure-JAX reference on already-sampled (N, M) inputs (faithful to torch)."""
    bin_width = (vmax - vmin) / num_bins
    sigma = bin_width / (2.0 * math.sqrt(2.0 * math.log(2.0)))
    bins = jnp.linspace(vmin, vmax, num_bins, dtype=jnp.float32)[None, :, None]  # (1,B,1)
    xf = x_flat[:, None, :]
    yf = y_flat[:, None, :]
    win_x = jnp.exp(-(xf - bins) ** 2 / (2 * sigma ** 2)) / (math.sqrt(2 * math.pi) * sigma)
    win_y = jnp.exp(-(yf - bins) ** 2 / (2 * sigma ** 2)) / (math.sqrt(2 * math.pi) * sigma)
    hist = jnp.einsum('nbm,ncm->nbc', win_x, win_y)
    hist_norm = hist.reshape(hist.shape[0], -1).sum(axis=1) + 1e-5
    p = hist / hist_norm[:, None, None]
    p_x = p.sum(axis=2)
    p_y = p.sum(axis=1)
    ent_x = -jnp.sum(p_x * jnp.log(p_x + 1e-5), axis=1)
    ent_y = -jnp.sum(p_y * jnp.log(p_y + 1e-5), axis=1)
    ent_j = -jnp.sum(p * jnp.log(p + 1e-5), axis=(1, 2))
    if normalised:
        return 2.0 - jnp.mean((ent_x + ent_y) / ent_j)
    return -jnp.mean(ent_x + ent_y - ent_j)


if __name__ == "__main__":
    key = jax.random.PRNGKey(0)
    kx, ky, ksamp = jax.random.split(key, 3)

    N, C, H, W = 2, 1, 16, 16          # module expects channel dim == 1
    x = jax.random.uniform(kx, (N, C, H, W), dtype=jnp.float32)
    y = jnp.clip(x + 0.1 * jax.random.normal(ky, (N, C, H, W)), 0.0, 1.0).astype(jnp.float32)

    loss = mi_loss_gaussian(x, y, ksamp,
                            vmin=0.0, vmax=1.0, num_bins=64,
                            sample_ratio=0.1, normalised=True)
    loss = jax.block_until_ready(loss)

    # Correctness check against a pure-JAX f32 reference on the same sampled
    # points.  The kernel uses bf16 MXU operands + an approx reciprocal, so
    # the tolerance is slightly looser than a pure-f32 comparison.
    numel = H * W
    idx_th = int(0.1 * numel)
    idx_choice = jax.random.permutation(ksamp, numel)[:idx_th]
    x_s = x.reshape(N, -1)[:, idx_choice]
    y_s = y.reshape(N, -1)[:, idx_choice]
    ref = _reference_mi(x_s, y_s, vmin=0.0, vmax=1.0, num_bins=64, normalised=True)

    assert jnp.isfinite(loss), loss
    assert jnp.allclose(loss, ref, rtol=5e-2, atol=1e-2), (loss, ref)

    print("KERNEL_OK")
</pallas_src>

<mosaic_0001>
module attributes {stable_mosaic.version = 11 : i64} {
  func.func @_mi_kernel(%arg0: i32, %arg1: i32, %arg2: memref<1x2x128xf32, #tpu.memory_space<vmem>>, %arg3: memref<1x2x128xf32, #tpu.memory_space<vmem>>, %arg4: memref<1x2x3xf32, #tpu.memory_space<vmem>>, %arg5: memref<128x128xf32, #tpu.memory_space<vmem>>) attributes {dimension_semantics = [#tpu.dimension_semantics<parallel>, #tpu.dimension_semantics<arbitrary>], iteration_bounds = array<i64: 1, 1>, scalar_prefetch = 0 : i64, scratch_operands = 1 : i64, tpu.core_type = #tpu.core_type<tc>, window_params = [{transform_indices = @transform_0, window_bounds = array<i64: 1, 2, 128>}, {transform_indices = @transform_1, window_bounds = array<i64: 1, 2, 128>}, {transform_indices = @transform_2, window_bounds = array<i64: 1, 2, 3>}]} {
    %c0_i32 = arith.constant 0 : i32
    %0 = arith.cmpi eq, %arg1, %c0_i32 : i32
    %1 = arith.extui %0 : i1 to i32
    %c0_i32_0 = arith.constant 0 : i32
    %2 = arith.cmpi ne, %1, %c0_i32_0 : i32
    scf.if %2 {
      %cst_16 = arith.constant 0.000000e+00 : f32
      %38 = vector.broadcast %cst_16 : f32 to vector<128x128xf32>
      %c0_17 = arith.constant 0 : index
      %c0_18 = arith.constant 0 : index
      %39 = vector.load %arg5[%c0_17, %c0_18] : memref<128x128xf32, #tpu.memory_space<vmem>>, vector<128x128xf32>
      tpu.vector_store %arg5[%c0_17, %c0_18], %38 {strides = array<i32>} : memref<128x128xf32, #tpu.memory_space<vmem>>, vector<128x128xf32>,
    } else {
    }
    %c0 = arith.constant 0 : index
    %c0_1 = arith.constant 0 : index
    %c0_2 = arith.constant 0 : index
    %3 = vector.load %arg2[%c0, %c0_1, %c0_2] : memref<1x2x128xf32, #tpu.memory_space<vmem>>, vector<1x2x128xf32>
    %4 = vector.shape_cast %3 : vector<1x2x128xf32> to vector<2x128xf32>
    %c0_3 = arith.constant 0 : index
    %c0_4 = arith.constant 0 : index
    %c0_5 = arith.constant 0 : index
    %5 = vector.load %arg3[%c0_3, %c0_4, %c0_5] : memref<1x2x128xf32, #tpu.memory_space<vmem>>, vector<1x2x128xf32>
    %6 = vector.shape_cast %5 : vector<1x2x128xf32> to vector<2x128xf32>
    %7 = tpu.iota {dimensions = array<i32: 1>} : vector<2x64x128xi32>
    %8 = arith.sitofp %7 : vector<2x64x128xi32> to vector<2x64x128xf32>
    %cst = arith.constant 0.0158730168 : f32
    %9 = vector.broadcast %cst : f32 to vector<2x64x128xf32>
    %10 = arith.mulf %8, %9 : vector<2x64x128xf32>
    %cst_6 = arith.constant 0.000000e+00 : f32
    %11 = vector.broadcast %cst_6 : f32 to vector<2x64x128xf32>
    %12 = arith.addf %11, %10 : vector<2x64x128xf32>
    %13 = vector.shape_cast %4 : vector<2x128xf32> to vector<2x1x128xf32>
    %14 = vector.broadcast %13 : vector<2x1x128xf32> to vector<2x64x128xf32>
    %15 = arith.subf %14, %12 : vector<2x64x128xf32>
    %16 = vector.shape_cast %6 : vector<2x128xf32> to vector<2x1x128xf32>
    %17 = vector.broadcast %16 : vector<2x1x128xf32> to vector<2x64x128xf32>
    %18 = arith.subf %17, %12 : vector<2x64x128xf32>
    %19 = arith.mulf %15, %15 : vector<2x64x128xf32>
    %cst_7 = arith.constant -11356.5234 : f32
    %20 = vector.broadcast %cst_7 : f32 to vector<2x64x128xf32>
    %21 = arith.mulf %19, %20 : vector<2x64x128xf32>
    %22 = math.exp %21 : vector<2x64x128xf32>
    %23 = arith.mulf %18, %18 : vector<2x64x128xf32>
    %cst_8 = arith.constant -11356.5234 : f32
    %24 = vector.broadcast %cst_8 : f32 to vector<2x64x128xf32>
    %25 = arith.mulf %23, %24 : vector<2x64x128xf32>
    %26 = math.exp %25 : vector<2x64x128xf32>
    %27 = vector.shape_cast %22 : vector<2x64x128xf32> to vector<128x128xf32>
    %28 = arith.truncf %27 : vector<128x128xf32> to vector<128x128xbf16>
    %29 = vector.shape_cast %26 : vector<2x64x128xf32> to vector<128x128xf32>
    %30 = arith.truncf %29 : vector<128x128xf32> to vector<128x128xbf16>
    %c0_9 = arith.constant 0 : index
    %c0_10 = arith.constant 0 : index
    %31 = vector.load %arg5[%c0_9, %c0_10] : memref<128x128xf32, #tpu.memory_space<vmem>>, vector<128x128xf32>
    %cst_11 = arith.constant dense<0.000000e+00> : vector<128x128xf32>
    %32 = tpu.matmul %28, %30, %cst_11 {dimension_numbers = #tpu.dot_dimension_numbers<[1], [1], [0], [0], [0, 0, 1, 0], [], []>} : vector<128x128xbf16>, vector<128x128xbf16>, vector<128x128xf32> -> vector<128x128xf32>
    %33 = arith.addf %31, %32 : vector<128x128xf32>
    %c0_12 = arith.constant 0 : index
    %c0_13 = arith.constant 0 : index
    %34 = vector.load %arg5[%c0_12, %c0_13] : memref<128x128xf32, #tpu.memory_space<vmem>>, vector<128x128xf32>
    tpu.vector_store %arg5[%c0_12, %c0_13], %33 {strides = array<i32>} : memref<128x128xf32, #tpu.memory_space<vmem>>, vector<128x128xf32>,
    %c0_i32_14 = arith.constant 0 : i32
    %35 = arith.cmpi eq, %arg1, %c0_i32_14 : i32
    %36 = arith.extui %35 : i1 to i32
    %c0_i32_15 = arith.constant 0 : i32
    %37 = arith.cmpi ne, %36, %c0_i32_15 : i32
    scf.if %37 {
      %38 = tpu.iota {dimensions = array<i32: 0>} : vector<2x3xi32>
      %39 = tpu.iota {dimensions = array<i32: 1>} : vector<2x3xi32>
      %cst_16 = arith.constant 0.000000e+00 : f32
      %40 = vector.broadcast %cst_16 : f32 to vector<2x3xf32>
      %c0_17 = arith.constant 0 : index
      %c0_18 = arith.constant 0 : index
      %41 = vector.load %arg5[%c0_17, %c0_18] : memref<128x128xf32, #tpu.memory_space<vmem>>, vector<64x64xf32>
      %42 = vector.shape_cast %41 : vector<64x64xf32> to vector<1x64x64xf32>
      %cst_19 = arith.constant dense<0.000000e+00> : vector<1xf32>
      %43 = vector.multi_reduction <add>, %42, %cst_19 [1, 2] : vector<1x64x64xf32> to vector<1xf32>
      %44 = vector.shape_cast %43 : vector<1xf32> to vector<1x1x1xf32>
      %45 = vector.extract %44[0, 0, 0] : f32 from vector<1x1x1xf32>
      %46 = vector.broadcast %45 : f32 to vector<1x1xf32>
      %cst_20 = arith.constant 9.99999974E-6 : f32
      %47 = vector.broadcast %cst_20 : f32 to vector<1x1xf32>
      %48 = arith.addf %46, %47 : vector<1x1xf32>
      %49 = tpu.reciprocal %48 {approx = true} : vector<1x1xf32> -> vector<1x1xf32>
      %50 = vector.broadcast %49 : vector<1x1xf32> to vector<64x64xf32>
      %51 = arith.mulf %41, %50 : vector<64x64xf32>
      %cst_21 = arith.constant dense<0.000000e+00> : vector<64xf32>
      %52 = vector.multi_reduction <add>, %51, %cst_21 [1] : vector<64x64xf32> to vector<64xf32>
      %53 = vector.shape_cast %52 : vector<64xf32> to vector<64x1xf32>
      %cst_22 = arith.constant dense<0.000000e+00> : vector<64xf32>
      %54 = vector.multi_reduction <add>, %51, %cst_22 [0] : vector<64x64xf32> to vector<64xf32>
      %55 = vector.shape_cast %54 : vector<64xf32> to vector<1x64xf32>
      %cst_23 = arith.constant 9.99999974E-6 : f32
      %56 = vector.broadcast %cst_23 : f32 to vector<64x1xf32>
      %57 = arith.addf %53, %56 : vector<64x1xf32>
      %58 = math.log %57 : vector<64x1xf32>
      %59 = arith.mulf %53, %58 : vector<64x1xf32>
      %60 = vector.shape_cast %59 : vector<64x1xf32> to vector<1x64x1xf32>
      %cst_24 = arith.constant dense<0.000000e+00> : vector<1xf32>
      %61 = vector.multi_reduction <add>, %60, %cst_24 [1, 2] : vector<1x64x1xf32> to vector<1xf32>
      %62 = vector.shape_cast %61 : vector<1xf32> to vector<1x1x1xf32>
      %63 = vector.extract %62[0, 0, 0] : f32 from vector<1x1x1xf32>
      %cst_25 = arith.constant 0.000000e+00 : f32
      %64 = arith.subf %cst_25, %63 : f32
      %cst_26 = arith.constant 9.99999974E-6 : f32
      %65 = vector.broadcast %cst_26 : f32 to vector<1x64xf32>
      %66 = arith.addf %55, %65 : vector<1x64xf32>
      %67 = math.log %66 : vector<1x64xf32>
      %68 = arith.mulf %55, %67 : vector<1x64xf32>
      %69 = vector.shape_cast %68 : vector<1x64xf32> to vector<1x1x64xf32>
      %cst_27 = arith.constant dense<0.000000e+00> : vector<1xf32>
      %70 = vector.multi_reduction <add>, %69, %cst_27 [1, 2] : vector<1x1x64xf32> to vector<1xf32>
      %71 = vector.shape_cast %70 : vector<1xf32> to vector<1x1x1xf32>
      %72 = vector.extract %71[0, 0, 0] : f32 from vector<1x1x1xf32>
      %cst_28 = arith.constant 0.000000e+00 : f32
      %73 = arith.subf %cst_28, %72 : f32
      %cst_29 = arith.constant 9.99999974E-6 : f32
      %74 = vector.broadcast %cst_29 : f32 to vector<64x64xf32>
      %75 = arith.addf %51, %74 : vector<64x64xf32>
      %76 = math.log %75 : vector<64x64xf32>
      %77 = arith.mulf %51, %76 : vector<64x64xf32>
      %78 = vector.shape_cast %77 : vector<64x64xf32> to vector<1x64x64xf32>
      %cst_30 = arith.constant dense<0.000000e+00> : vector<1xf32>
      %79 = vector.multi_reduction <add>, %78, %cst_30 [1, 2] : vector<1x64x64xf32> to vector<1xf32>
      %80 = vector.shape_cast %79 : vector<1xf32> to vector<1x1x1xf32>
      %81 = vector.extract %80[0, 0, 0] : f32 from vector<1x1x1xf32>
      %cst_31 = arith.constant 0.000000e+00 : f32
      %82 = arith.subf %cst_31, %81 : f32
      %c0_i32_32 = arith.constant 0 : i32
      %83 = vector.broadcast %c0_i32_32 : i32 to vector<2x3xi32>
      %84 = arith.cmpi eq, %39, %83 : vector<2x3xi32>
      %c1_i32 = arith.constant 1 : i32
      %85 = vector.broadcast %c1_i32 : i32 to vector<2x3xi32>
      %86 = arith.cmpi eq, %39, %85 : vector<2x3xi32>
      %87 = vector.broadcast %73 : f32 to vector<2x3xf32>
      %88 = vector.broadcast %82 : f32 to vector<2x3xf32>
      %89 = arith.select %86, %87, %88 : vector<2x3xi1>, vector<2x3xf32>
      %90 = vector.broadcast %64 : f32 to vector<2x3xf32>
      %91 = arith.select %84, %90, %89 : vector<2x3xi1>, vector<2x3xf32>
      %c0_i32_33 = arith.constant 0 : i32
      %92 = vector.broadcast %c0_i32_33 : i32 to vector<2x3xi32>
      %93 = arith.cmpi eq, %38, %92 : vector<2x3xi32>
      %94 = arith.select %93, %91, %40 : vector<2x3xi1>, vector<2x3xf32>
      %c64 = arith.constant 64 : index
      %c64_34 = arith.constant 64 : index
      %95 = vector.load %arg5[%c64, %c64_34] : memref<128x128xf32, #tpu.memory_space<vmem>>, vector<64x64xf32>
      %96 = vector.shape_cast %95 : vector<64x64xf32> to vector<1x64x64xf32>
      %cst_35 = arith.constant dense<0.000000e+00> : vector<1xf32>
      %97 = vector.multi_reduction <add>, %96, %cst_35 [1, 2] : vector<1x64x64xf32> to vector<1xf32>
      %98 = vector.shape_cast %97 : vector<1xf32> to vector<1x1x1xf32>
      %99 = vector.extract %98[0, 0, 0] : f32 from vector<1x1x1xf32>
      %100 = vector.broadcast %99 : f32 to vector<1x1xf32>
      %cst_36 = arith.constant 9.99999974E-6 : f32
      %101 = vector.broadcast %cst_36 : f32 to vector<1x1xf32>
      %102 = arith.addf %100, %101 : vector<1x1xf32>
      %103 = tpu.reciprocal %102 {approx = true} : vector<1x1xf32> -> vector<1x1xf32>
      %104 = vector.broadcast %103 : vector<1x1xf32> to vector<64x64xf32>
      %105 = arith.mulf %95, %104 : vector<64x64xf32>
      %cst_37 = arith.constant dense<0.000000e+00> : vector<64xf32>
      %106 = vector.multi_reduction <add>, %105, %cst_37 [1] : vector<64x64xf32> to vector<64xf32>
      %107 = vector.shape_cast %106 : vector<64xf32> to vector<64x1xf32>
      %cst_38 = arith.constant dense<0.000000e+00> : vector<64xf32>
      %108 = vector.multi_reduction <add>, %105, %cst_38 [0] : vector<64x64xf32> to vector<64xf32>
      %109 = vector.shape_cast %108 : vector<64xf32> to vector<1x64xf32>
      %cst_39 = arith.constant 9.99999974E-6 : f32
      %110 = vector.broadcast %cst_39 : f32 to vector<64x1xf32>
      %111 = arith.addf %107, %110 : vector<64x1xf32>
      %112 = math.log %111 : vector<64x1xf32>
      %113 = arith.mulf %107, %112 : vector<64x1xf32>
      %114 = vector.shape_cast %113 : vector<64x1xf32> to vector<1x64x1xf32>
      %cst_40 = arith.constant dense<0.000000e+00> : vector<1xf32>
      %115 = vector.multi_reduction <add>, %114, %cst_40 [1, 2] : vector<1x64x1xf32> to vector<1xf32>
      %116 = vector.shape_cast %115 : vector<1xf32> to vector<1x1x1xf32>
      %117 = vector.extract %116[0, 0, 0] : f32 from vector<1x1x1xf32>
      %cst_41 = arith.constant 0.000000e+00 : f32
      %118 = arith.subf %cst_41, %117 : f32
      %cst_42 = arith.constant 9.99999974E-6 : f32
      %119 = vector.broadcast %cst_42 : f32 to vector<1x64xf32>
      %120 = arith.addf %109, %119 : vector<1x64xf32>
      %121 = math.log %120 : vector<1x64xf32>
      %122 = arith.mulf %109, %121 : vector<1x64xf32>
      %123 = vector.shape_cast %122 : vector<1x64xf32> to vector<1x1x64xf32>
      %cst_43 = arith.constant dense<0.000000e+00> : vector<1xf32>
      %124 = vector.multi_reduction <add>, %123, %cst_43 [1, 2] : vector<1x1x64xf32> to vector<1xf32>
      %125 = vector.shape_cast %124 : vector<1xf32> to vector<1x1x1xf32>
      %126 = vector.extract %125[0, 0, 0] : f32 from vector<1x1x1xf32>
      %cst_44 = arith.constant 0.000000e+00 : f32
      %127 = arith.subf %cst_44, %126 : f32
      %cst_45 = arith.constant 9.99999974E-6 : f32
      %128 = vector.broadcast %cst_45 : f32 to vector<64x64xf32>
      %129 = arith.addf %105, %128 : vector<64x64xf32>
      %130 = math.log %129 : vector<64x64xf32>
      %131 = arith.mulf %105, %130 : vector<64x64xf32>
      %132 = vector.shape_cast %131 : vector<64x64xf32> to vector<1x64x64xf32>
      %cst_46 = arith.constant dense<0.000000e+00> : vector<1xf32>
      %133 = vector.multi_reduction <add>, %132, %cst_46 [1, 2] : vector<1x64x64xf32> to vector<1xf32>
      %134 = vector.shape_cast %133 : vector<1xf32> to vector<1x1x1xf32>
      %135 = vector.extract %134[0, 0, 0] : f32 from vector<1x1x1xf32>
      %cst_47 = arith.constant 0.000000e+00 : f32
      %136 = arith.subf %cst_47, %135 : f32
      %c0_i32_48 = arith.constant 0 : i32
      %137 = vector.broadcast %c0_i32_48 : i32 to vector<2x3xi32>
      %138 = arith.cmpi eq, %39, %137 : vector<2x3xi32>
      %c1_i32_49 = arith.constant 1 : i32
      %139 = vector.broadcast %c1_i32_49 : i32 to vector<2x3xi32>
      %140 = arith.cmpi eq, %39, %139 : vector<2x3xi32>
      %141 = vector.broadcast %127 : f32 to vector<2x3xf32>
      %142 = vector.broadcast %136 : f32 to vector<2x3xf32>
      %143 = arith.select %140, %141, %142 : vector<2x3xi1>, vector<2x3xf32>
      %144 = vector.broadcast %118 : f32 to vector<2x3xf32>
      %145 = arith.select %138, %144, %143 : vector<2x3xi1>, vector<2x3xf32>
      %c1_i32_50 = arith.constant 1 : i32
      %146 = vector.broadcast %c1_i32_50 : i32 to vector<2x3xi32>
      %147 = arith.cmpi eq, %38, %146 : vector<2x3xi32>
      %148 = arith.select %147, %145, %94 : vector<2x3xi1>, vector<2x3xf32>
      %c0_51 = arith.constant 0 : index
      %c0_52 = arith.constant 0 : index
      %c0_53 = arith.constant 0 : index
      %149 = vector.load %arg4[%c0_51, %c0_52, %c0_53] : memref<1x2x3xf32, #tpu.memory_space<vmem>>, vector<1x2x3xf32>
      %150 = vector.shape_cast %149 : vector<1x2x3xf32> to vector<2x3xf32>
      %151 = vector.shape_cast %148 : vector<2x3xf32> to vector<1x2x3xf32>
      tpu.vector_store %arg4[%c0_51, %c0_52, %c0_53], %151 {strides = array<i32>} : memref<1x2x3xf32, #tpu.memory_space<vmem>>, vector<1x2x3xf32>,
    } else {
    }
    return
  }
  func.func @transform_0(%arg0: i32, %arg1: i32) -> (i32, i32, i32) {
    %c0_i32 = arith.constant 0 : i32
    %c0_i32_0 = arith.constant 0 : i32
    return %arg0, %c0_i32, %arg1 : i32, i32, i32
  }
  func.func @transform_1(%arg0: i32, %arg1: i32) -> (i32, i32, i32) {
    %c0_i32 = arith.constant 0 : i32
    %c0_i32_0 = arith.constant 0 : i32
    return %arg0, %c0_i32, %arg1 : i32, i32, i32
  }
  func.func @transform_2(%arg0: i32, %arg1: i32) -> (i32, i32, i32) {
    %c0_i32 = arith.constant 0 : i32
    %c0_i32_0 = arith.constant 0 : i32
    %c0_i32_1 = arith.constant 0 : i32
    return %arg0, %c0_i32, %c0_i32_0 : i32, i32, i32
  }
}

</mosaic_0001>

<bundles_post_ra>
// kernel: tpu_custom_call.1
= control target key start
LH: loop header
LB: loop body
LE: loop exit
PB: predicated region body
PF: predicated region fallthrough
CT: control target
= control target key end

     0   :  { %7 = vsyncpa [#allocation4], 0  ;;  %s1510_s0 = inlined_call_operand.hbm [shape: f32[1,2,128], index: 0, kind: input, shape index: {}]   ;;  %s1511_s1 = inlined_call_operand.hbm [shape: f32[1,2,128], index: 1, kind: input, shape index: {}]   ;;  %s1512_s2 = inlined_call_operand.hbm [shape: f32[1,2,3], index: 2, kind: output, shape index: {}]  }
   0x1   :  { %8 = vsyncpa [#allocation7], 0 }
   0x2   :  { %9 = vsyncpa [#allocation5], 0  ;;  %s15_s11 = sshll.u32 %s1510_s0, 4  ;;  %s1209_s12 = smov [#allocation3]   ;;  %s16_s11 = int_to_ptr.hbm [resolvable:$true] %s15_s11 }
   0x3   :  { %s17_s13 = sshll.u32 %s1209_s12, 4  ;;  %s26_s16 = sshll.u32 %s1511_s1, 4  ;;  %s18_s13 = int_to_ptr.vmem [resolvable:$true] %s17_s13  ;;  %s27_s16 = int_to_ptr.hbm [resolvable:$true] %s26_s16 }
   0x4   :  { %20 = dma.hbm_to_vmem [thread:$0]  %s16_s11, 32, %s18_s13, [#allocation4]  }
   0x5   :  { %s1210_s17 = smov [#allocation6]  }
   0x6   :  { %s28_s18 = sshll.u32 %s1210_s17, 4  ;;  %s29_s18 = int_to_ptr.vmem [resolvable:$true] %s28_s18 }
   0x7   :  { %31 = dma.hbm_to_vmem [thread:$0]  %s27_s16, 32, %s29_s18, [#allocation7]  }
   0x8   :  { %1203 = dma.done.wait [#allocation4], 32  }
   0x9   :  { %1204 = vsyncadd [#allocation4], 4294967264 }
   0xa   :  { %1205 = dma.done.wait [#allocation7], 32  }
   0xb   :  { %1206 = vsyncadd [#allocation7], 4294967264  ;;  %v62_v0 = vlaneseq  ;;  %v61_v12 = vld [vmem:[#allocation6] sm:$0x3]  ;;  %vm393_vm0 = vcmask 523264   ;;  %s1211_s0 = smov 64  }
   0xc   :  { %v118_v14 = vrot.slane %v61_v12, 1  ;;  %v1269_v54 = vperm.slane %v61_v12, 0  ;;  %vm528_vm1 = vcmask 516096   ;;  %vm498_vm2 = vcmask 7168   ;;  %s1212_s4 = smov [#allocation8]   ;;  %s940_s8 = sshll.u32 %s1512_s2, 4  ;;  %s941_s8 = int_to_ptr.hbm [resolvable:$true] %s940_s8 }
   0xd   :  { %v1235_v1 = vshrl.u32 %v62_v0, 7  ;;  %vm737_vm5 = vcmask 1048064   ;;  %s938_s5 = sshll.u32 %s1212_s4, 4  ;;  %vm931_vm8 = vcmask 17408   ;;  %s939_s5 = int_to_ptr.vmem [resolvable:$true] %s938_s5 }
   0xe   :  { %v120_v19 = vperm.slane %v118_v14, 0 }
   0xf   :  { %v69_v2 = vadd.s32 48, %v1235_v1  ;;  %v70_v3 = vadd.s32 56, %v1235_v1  ;;  %v67_v4 = vadd.s32 32, %v1235_v1  ;;  %v68_v5 = vadd.s32 40, %v1235_v1 }
  0x10   :  { %v65_v6 = vadd.s32 16, %v1235_v1  ;;  %v66_v7 = vadd.s32 24, %v1235_v1  ;;  %v64_v27 = vadd.s32 8, %v1235_v1  ;;  %v71_v32 = vcvt.s32.f32 %v1235_v1 }
  0x11   :  { %v77_v8 = vcvt.s32.f32 %v69_v2  ;;  %v78_v9 = vcvt.s32.f32 %v70_v3  ;;  %v75_v10 = vcvt.s32.f32 %v67_v4  ;;  %v76_v11 = vcvt.s32.f32 %v68_v5 }
  0x12   :  { %v73_v13 = vcvt.s32.f32 %v65_v6  ;;  %v74_v18 = vcvt.s32.f32 %v66_v7  ;;  %v72_v39 = vcvt.s32.f32 %v64_v27  ;;  %v1263_v44 = vmul.f32 0.015873017, %v71_v32 }
  0x13   :  { %v1243_v15 = vmul.f32 0.015873017, %v77_v8  ;;  %v1245_v16 = vmul.f32 0.015873017, %v78_v9  ;;  %v1247_v17 = vmul.f32 0.015873017, %v75_v10 }
  0x14   :  { %v1249_v20 = vmul.f32 0.015873017, %v76_v11  ;;  %v1251_v21 = vmul.f32 0.015873017, %v73_v13  ;;  %v1257_v26 = vmul.f32 0.015873017, %v74_v18  ;;  %v131_v49 = vsub.f32 %v120_v19, %v1263_v44 }
  0x15   :  { %v137_v22 = vsub.f32 %v120_v19, %v1243_v15  ;;  %v138_v23 = vsub.f32 %v120_v19, %v1245_v16  ;;  %v135_v24 = vsub.f32 %v120_v19, %v1247_v17  ;;  %v1265_v47 = vmul.f32 0.015873017, %v72_v39 }
  0x16   :  { %v136_v25 = vsub.f32 %v120_v19, %v1249_v20  ;;  %v133_v36 = vsub.f32 %v120_v19, %v1251_v21  ;;  %v134_v38 = vsub.f32 %v120_v19, %v1257_v26  ;;  %v211_v57 = vmul.f32 %v131_v49, %v131_v49 }
  0x17   :  { %v217_v28 = vmul.f32 %v137_v22, %v137_v22  ;;  %v218_v29 = vmul.f32 %v138_v23, %v138_v23  ;;  %v215_v30 = vmul.f32 %v135_v24, %v135_v24  ;;  %v132_v51 = vsub.f32 %v120_v19, %v1265_v47 }
  0x18   :  { %v216_v31 = vmul.f32 %v136_v25, %v136_v25  ;;  %v213_v43 = vmul.f32 %v133_v36, %v133_v36  ;;  %v214_v46 = vmul.f32 %v134_v38, %v134_v38  ;;  %v227_v62 = vmul.f32 -11356.523, %v211_v57  ;;  %v1283_v38 = vld [vmem:[#allocation3] sm:$0x3] }
  0x19   :  { %v233_v33 = vmul.f32 -11356.523, %v217_v28  ;;  %v234_v34 = vmul.f32 -11356.523, %v218_v29  ;;  %v231_v35 = vmul.f32 -11356.523, %v215_v30  ;;  %v212_v59 = vmul.f32 %v132_v51, %v132_v51 }
  0x1a   :  { %v232_v37 = vmul.f32 -11356.523, %v216_v31  ;;  %v229_v48 = vmul.f32 -11356.523, %v213_v43  ;;  %v230_v50 = vmul.f32 -11356.523, %v214_v46  ;;  %v129_v63 = vsub.f32 %v1269_v54, %v1243_v15 }
  0x1b   :  { %v263_v40 = vmul.f32 1.442695, %v233_v33  ;;  %v265_v41 = vmul.f32 1.442695, %v234_v34  ;;  %v259_v42 = vmul.f32 1.442695, %v231_v35  ;;  %v130_v3 = vsub.f32 %v1269_v54, %v1245_v16 }
  0x1c   :  { %v261_v45 = vmul.f32 1.442695, %v232_v37  ;;  %v255_v56 = vmul.f32 1.442695, %v229_v48  ;;  %v257_v58 = vmul.f32 1.442695, %v230_v50  ;;  %v209_v6 = vmul.f32 %v129_v63, %v129_v63 }
  0x1d   :  { %995 = vpow2.f32 %v263_v40  ;;  %v228_v2 = vmul.f32 -11356.523, %v212_v59  ;;  %v251_v5 = vmul.f32 1.442695, %v227_v62  ;;  %v210_v8 = vmul.f32 %v130_v3, %v130_v3 }
  0x1e   :  { %997 = vpow2.f32 %v265_v41  ;;  %v225_v11 = vmul.f32 -11356.523, %v209_v6  ;;  %v127_v12 = vsub.f32 %v1269_v54, %v1247_v17  ;;  %v128_v14 = vsub.f32 %v1269_v54, %v1249_v20 }
  0x1f   :  { %999 = vpow2.f32 %v259_v42  ;;  %v253_v7 = vmul.f32 1.442695, %v228_v2  ;;  %v226_v13 = vmul.f32 -11356.523, %v210_v8  ;;  %v125_v29 = vsub.f32 %v1269_v54, %v1251_v21 }
  0x20   :  { %1001 = vpow2.f32 %v261_v45  ;;  %v247_v19 = vmul.f32 1.442695, %v225_v11  ;;  %v207_v22 = vmul.f32 %v127_v12, %v127_v12  ;;  %v208_v24 = vmul.f32 %v128_v14, %v128_v14 }
  0x21   :  { %1003 = vpow2.f32 %v255_v56  ;;  %v249_v23 = vmul.f32 1.442695, %v226_v13  ;;  %v126_v31 = vsub.f32 %v1269_v54, %v1257_v26  ;;  %v205_v34 = vmul.f32 %v125_v29, %v125_v29 }
  0x22   :  { %1005 = vpow2.f32 %v257_v58  ;;  %v223_v28 = vmul.f32 -11356.523, %v207_v22  ;;  %v224_v30 = vmul.f32 -11356.523, %v208_v24  ;;  %v123_v41 = vsub.f32 %v1269_v54, %v1263_v44 }
  0x23   :  { %v996_v52 = vpop.eup %995  ;;  %1007 = vpow2.f32 %v251_v5  ;;  %v206_v36 = vmul.f32 %v126_v31, %v126_v31  ;;  %v221_v40 = vmul.f32 -11356.523, %v205_v34  ;;  %v97_v42 = vperm.slane %v1283_v38, 0 }
  0x24   :  { %v998_v53 = vpop.eup %997  ;;  %1009 = vpow2.f32 %v253_v7  ;;  %v243_v33 = vmul.f32 1.442695, %v223_v28  ;;  %v245_v35 = vmul.f32 1.442695, %v224_v30  ;;  %v124_v45 = vsub.f32 %v1269_v54, %v1265_v47 }
  0x25   :  { %v282_v55 = vpack.c.bf16 %v998_v53, %v996_v52  ;;  %v1000_v60 = vpop.eup %999  ;;  %1011 = vpow2.f32 %v247_v19  ;;  %v222_v43 = vmul.f32 -11356.523, %v206_v36  ;;  %v239_v48 = vmul.f32 1.442695, %v221_v40 }
  0x26   :  { %v1002_v61 = vpop.eup %1001  ;;  %1013 = vpow2.f32 %v249_v23  ;;  %v203_v49 = vmul.f32 %v123_v41, %v123_v41  ;;  %v204_v51 = vmul.f32 %v124_v45, %v124_v45  ;;  %v101_v52 = vsub.f32 %v97_v42, %v1263_v44 }
  0x27   :  { %299 = vmatpush.bf16.xpose.msra.mxu0 %v282_v55  ;;  %951 = vmatpush.bf16.xpose.msra.mxu1 %v282_v55  ;;  %v281_v4 = vpack.c.bf16 %v1002_v61, %v1000_v60  ;;  %v1004_v9 = vpop.eup %1003  ;;  %1015 = vpow2.f32 %v243_v33  ;;  %v241_v50 = vmul.f32 1.442695, %v222_v43  ;;  %v105_v57 = vsub.f32 %v97_v42, %v1247_v17 }
  0x28   :  { %952 = vmatpush.bf16.xpose.msra.mxu2 %v282_v55  ;;  %953 = vmatpush.bf16.xpose.msra.mxu3 %v282_v55  ;;  %v1006_v10 = vpop.eup %1005  ;;  %1017 = vpow2.f32 %v245_v35  ;;  %v102_v55 = vsub.f32 %v97_v42, %v1265_v47  ;;  %v219_v58 = vmul.f32 -11356.523, %v203_v49  ;;  %v106_v54 = vsub.f32 %v97_v42, %v1249_v20 }
  0x29   :  { %v280_v18 = vpack.c.bf16 %v1006_v10, %v1004_v9  ;;  %v1008_v25 = vpop.eup %1007  ;;  %1019 = vpow2.f32 %v239_v48  ;;  %v220_v59 = vmul.f32 -11356.523, %v204_v51  ;;  %v139_v60 = vmul.f32 %v101_v52, %v101_v52 }
  0x2a   :  { %v1010_v27 = vpop.eup %1009  ;;  %1021 = vpow2.f32 %v241_v50  ;;  %v140_v62 = vmul.f32 %v102_v55, %v102_v55  ;;  %v143_v63 = vmul.f32 %v105_v57, %v105_v57  ;;  %v235_v2 = vmul.f32 1.442695, %v219_v58 }
  0x2b   :  { %v279_v32 = vpack.c.bf16 %v1010_v27, %v1008_v25  ;;  %v1012_v37 = vpop.eup %1011  ;;  %v144_v3 = vmul.f32 %v106_v54, %v106_v54  ;;  %v155_v5 = vmul.f32 -11356.523, %v139_v60  ;;  %v103_v19 = vsub.f32 %v97_v42, %v1251_v21 }
  0x2c   :  { %v1014_v39 = vpop.eup %1013  ;;  %v156_v7 = vmul.f32 -11356.523, %v140_v62  ;;  %v159_v9 = vmul.f32 -11356.523, %v143_v63  ;;  %1023 = vpow2.f32 %v235_v2  ;;  %v104_v23 = vsub.f32 %v97_v42, %v1257_v26 }
  0x2d   :  { %v278_v46 = vpack.c.bf16 %v1014_v39, %v1012_v37  ;;  %v1016_v53 = vpop.eup %1015  ;;  %v160_v10 = vmul.f32 -11356.523, %v144_v3  ;;  %v171_v11 = vmul.f32 1.442695, %v155_v5  ;;  %v107_v25 = vsub.f32 %v97_v42, %v1243_v15 }
  0x2e   :  { %v1018_v56 = vpop.eup %1017  ;;  %v173_v13 = vmul.f32 1.442695, %v156_v7  ;;  %v179_v14 = vmul.f32 1.442695, %v159_v9  ;;  %v108_v27 = vsub.f32 %v97_v42, %v1245_v16  ;;  %v141_v28 = vmul.f32 %v103_v19, %v103_v19 }
  0x2f   :  { %300 = vmatpush.bf16.xpose.msra.mxu0 %v281_v4  ;;  %954 = vmatpush.bf16.xpose.msra.mxu1 %v281_v4  ;;  %v277_v61 = vpack.c.bf16 %v1018_v56, %v1016_v53  ;;  %v1020_v6 = vpop.eup %1019  ;;  %v142_v30 = vmul.f32 %v104_v23, %v104_v23  ;;  %v96_v57 = vrot.slane %v1283_v38, 1  ;;  %vm604_vm6 = vcmp.eq.s32.totalorder %v1235_v1, 0 }
  0x30   :  { %955 = vmatpush.bf16.xpose.msra.mxu2 %v281_v4  ;;  %956 = vmatpush.bf16.xpose.msra.mxu3 %v281_v4  ;;  %v237_v4 = vmul.f32 1.442695, %v220_v59  ;;  %v1022_v8 = vpop.eup %1021  ;;  %v146_v34 = vmul.f32 %v108_v27, %v108_v27  ;;  %v157_v36 = vmul.f32 -11356.523, %v141_v28  ;;  %vm929_vm7 = vcmp.eq.s32.totalorder %v1235_v1, 1 }
  0x31   :  { %v276_v12 = vpack.c.bf16 %v1022_v8, %v1020_v6  ;;  %v158_v39 = vmul.f32 -11356.523, %v142_v30  ;;  %v98_v58 = vperm.slane %v96_v57, 0 }
  0x32   :  { %1025 = vpow2.f32 %v237_v4  ;;  %v1024_v22 = vpop.eup %1023  ;;  %v162_v41 = vmul.f32 -11356.523, %v146_v34  ;;  %v175_v42 = vmul.f32 1.442695, %v157_v36 }
  0x33   :  { %1027 = vpow2.f32 %v171_v11  ;;  %v109_v54 = vsub.f32 %v98_v58, %v1263_v44  ;;  %v110_v59 = vsub.f32 %v98_v58, %v1265_v47  ;;  %v111_v7 = vsub.f32 %v98_v58, %v1251_v21 }
  0x34   :  { %1029 = vpow2.f32 %v173_v13  ;;  %v185_v49 = vmul.f32 1.442695, %v162_v41  ;;  %v112_v38 = vsub.f32 %v98_v58, %v1257_v26  ;;  %v113_v21 = vsub.f32 %v98_v58, %v1247_v17 }
  0x35   :  { %1031 = vpow2.f32 %v179_v14  ;;  %v147_v60 = vmul.f32 %v109_v54, %v109_v54  ;;  %v149_v8 = vmul.f32 %v111_v7, %v111_v7  ;;  %v114_v26 = vsub.f32 %v98_v58, %v1249_v20 }
  0x36   :  { %v150_v44 = vmul.f32 %v112_v38, %v112_v38  ;;  %v115_v28 = vsub.f32 %v98_v58, %v1243_v15 }
  0x37   :  { %301 = vmatpush.bf16.xpose.msra.mxu0 %v280_v18  ;;  %957 = vmatpush.bf16.xpose.msra.mxu1 %v280_v18  ;;  %v163_v62 = vmul.f32 -11356.523, %v147_v60  ;;  %v165_v9 = vmul.f32 -11356.523, %v149_v8  ;;  %v152_v23 = vmul.f32 %v114_v26, %v114_v26 }
  0x38   :  { %958 = vmatpush.bf16.xpose.msra.mxu2 %v280_v18  ;;  %959 = vmatpush.bf16.xpose.msra.mxu3 %v280_v18  ;;  %v181_v18 = vmul.f32 1.442695, %v160_v10  ;;  %v1026_v24 = vpop.eup %1025  ;;  %v166_v47 = vmul.f32 -11356.523, %v150_v44 }
  0x39   :  { %v275_v29 = vpack.c.bf16 %v1026_v24, %v1024_v22  ;;  %v1028_v31 = vpop.eup %1027  ;;  %v187_v2 = vmul.f32 1.442695, %v163_v62  ;;  %v191_v10 = vmul.f32 1.442695, %v165_v9  ;;  %v151_v22 = vmul.f32 %v113_v21, %v113_v21 }
  0x3a   :  { %1033 = vpow2.f32 %v181_v18  ;;  %v1030_v33 = vpop.eup %1029  ;;  %v193_v11 = vmul.f32 1.442695, %v166_v47  ;;  %v168_v27 = vmul.f32 -11356.523, %v152_v23 }
  0x3b   :  { %v1032_v35 = vpop.eup %1031  ;;  %v267_v43 = vpack.c.bf16 %v1030_v33, %v1028_v31  ;;  %1035 = vpow2.f32 %v175_v42  ;;  %v153_v33 = vmul.f32 %v115_v28, %v115_v28 }
  0x3d   :  { %v169_v20 = vmul.f32 -11356.523, %v153_v33 }
  0x3f   :  { %302 = vmatpush.bf16.xpose.msra.mxu0 %v279_v32  ;;  %960 = vmatpush.bf16.xpose.msra.mxu1 %v279_v32 }
  0x40   :  { %961 = vmatpush.bf16.xpose.msra.mxu2 %v279_v32  ;;  %962 = vmatpush.bf16.xpose.msra.mxu3 %v279_v32  ;;  %v145_v32 = vmul.f32 %v107_v25, %v107_v25  ;;  %v1034_v37 = vpop.eup %1033  ;;  %v167_v25 = vmul.f32 -11356.523, %v151_v22 }
  0x41   :  { %v269_v45 = vpack.c.bf16 %v1034_v37, %v1032_v35  ;;  %v1036_v50 = vpop.eup %1035 }
  0x42   :  { %v161_v40 = vmul.f32 -11356.523, %v145_v32  ;;  %v195_v31 = vmul.f32 1.442695, %v167_v25  ;;  %v197_v32 = vmul.f32 1.442695, %v168_v27 }
  0x44   :  { %v183_v48 = vmul.f32 1.442695, %v161_v40  ;;  %v199_v40 = vmul.f32 1.442695, %v169_v20 }
  0x47   :  { %303 = vmatpush.bf16.xpose.msra.mxu0 %v278_v46  ;;  %963 = vmatpush.bf16.xpose.msra.mxu1 %v278_v46 }
  0x48   :  { %964 = vmatpush.bf16.xpose.msra.mxu2 %v278_v46  ;;  %965 = vmatpush.bf16.xpose.msra.mxu3 %v278_v46  ;;  %v177_v46 = vmul.f32 1.442695, %v158_v39 }
  0x4a   :  { %1037 = vpow2.f32 %v177_v46 }
  0x4b   :  { %1039 = vpow2.f32 %v183_v48 }
  0x4c   :  { %1041 = vpow2.f32 %v185_v49 }
  0x4d   :  { %1043 = vpow2.f32 %v187_v2 }
  0x4f   :  { %304 = vmatpush.bf16.xpose.msra.mxu0 %v277_v61  ;;  %966 = vmatpush.bf16.xpose.msra.mxu1 %v277_v61 }
  0x50   :  { %967 = vmatpush.bf16.xpose.msra.mxu2 %v277_v61  ;;  %968 = vmatpush.bf16.xpose.msra.mxu3 %v277_v61  ;;  %v1038_v51 = vpop.eup %1037  ;;  %v148_v61 = vmul.f32 %v110_v59, %v110_v59 }
  0x51   :  { %v1040_v52 = vpop.eup %1039  ;;  %v268_v55 = vpack.c.bf16 %v1038_v51, %v1036_v50 }
  0x52   :  { %v1042_v53 = vpop.eup %1041  ;;  %v164_v63 = vmul.f32 -11356.523, %v148_v61 }
  0x53   :  { %v270_v56 = vpack.c.bf16 %v1042_v53, %v1040_v52  ;;  %v1044_v4 = vpop.eup %1043 }
  0x54   :  { %v189_v3 = vmul.f32 1.442695, %v164_v63 }
  0x56   :  { %1045 = vpow2.f32 %v189_v3 }
  0x57   :  { %305 = vmatpush.bf16.xpose.msra.mxu0 %v276_v12  ;;  %969 = vmatpush.bf16.xpose.msra.mxu1 %v276_v12  ;;  %1047 = vpow2.f32 %v191_v10 }
  0x58   :  { %970 = vmatpush.bf16.xpose.msra.mxu2 %v276_v12  ;;  %971 = vmatpush.bf16.xpose.msra.mxu3 %v276_v12  ;;  %1049 = vpow2.f32 %v193_v11 }
  0x59   :  { %1051 = vpow2.f32 %v195_v31 }
  0x5a   :  { %1053 = vpow2.f32 %v197_v32 }
  0x5b   :  { %1055 = vpow2.f32 %v199_v40 }
  0x5c   :  { %v1046_v5 = vpop.eup %1045 }
  0x5d   :  { %v271_v6 = vpack.c.bf16 %v1046_v5, %v1044_v4  ;;  %v1048_v12 = vpop.eup %1047 }
  0x5e   :  { %v1050_v13 = vpop.eup %1049 }
  0x5f   :  { %306 = vmatpush.bf16.xpose.msra.mxu0 %v275_v29  ;;  %972 = vmatpush.bf16.xpose.msra.mxu1 %v275_v29  ;;  %v272_v14 = vpack.c.bf16 %v1050_v13, %v1048_v12  ;;  %v1052_v36 = vpop.eup %1051 }
  0x60   :  { %973 = vmatpush.bf16.xpose.msra.mxu2 %v275_v29  ;;  %974 = vmatpush.bf16.xpose.msra.mxu3 %v275_v29  ;;  %v116_v29 = vsub.f32 %v98_v58, %v1245_v16  ;;  %v1054_v37 = vpop.eup %1053 }
  0x61   :  { %v273_v16 = vpack.c.bf16 %v1054_v37, %v1052_v36 }
  0x62   :  { %v154_v17 = vmul.f32 %v116_v29, %v116_v29 }
  0x64   :  { %v170_v35 = vmul.f32 -11356.523, %v154_v17 }
  0x66   :  { %307 = vmatmul.bf16.vlgmr.msra.gmra.mxu0 %v267_v43  ;;  %317 = vmatmul.bf16.vlgmr.msra.gmra.mxu1 %v269_v45  ;;  %v201_v45 = vmul.f32 1.442695, %v170_v35 }
  0x67   :  { %327 = vmatmul.bf16.vlgmr.msra.gmra.mxu2 %v271_v6  ;;  %337 = vmatmul.bf16.vlgmr.msra.gmra.mxu3 %v273_v16 }
  0x68   :  { %1057 = vpow2.f32 %v201_v45 }
  0x76   :  { %312 = vmatmul.bf16.gmra.mxu0 %v268_v55  ;;  %322 = vmatmul.bf16.gmra.mxu1 %v270_v56  ;;  %v1056_v55 = vpop.eup %1055 }
  0x77   :  { %332 = vmatmul.bf16.gmra.mxu2 %v272_v14  ;;  %v1058_v58 = vpop.eup %1057 }
  0x78   :  { %v274_v62 = vpack.c.bf16 %v1058_v58, %v1056_v55 }
  0x7a   :  { %342 = vmatmul.bf16.gmra.mxu3 %v274_v62 }
  0xe3   :  { %v1303_v18 = vpop.f32.mrf.mxu0  ;;  %v1305_v19 = vpop.f32.mrf.mxu1 }
  0xe4   :  { %v394_v41 = vsel %vm393_vm0, %v1303_v18, 0.0  ;;  %v401_v51 = vsel %vm393_vm0, %v1305_v19, 0.0 }
  0xea   :  { %v1333_v63 = vpop.f32.mrf.mxu2  ;;  %v1349_v7 = vpop.f32.mrf.mxu3 }
  0xeb   :  { %v1309_v24 = vpop.f32.mrf.mxu0  ;;  %v1313_v30 = vpop.f32.mrf.mxu1 }
  0xec   :  { %v395_v39 = vsel %vm393_vm0, %v1309_v24, 0.0  ;;  %v403_v53 = vsel %vm393_vm0, %v1313_v30, 0.0 }
  0xed   :  { %v396_v42 = vadd.f32 %v395_v39, %v394_v41 }
  0xf2   :  { %v1337_v2 = vpop.f32.mrf.mxu2 }
  0xf3   :  { %v313_v34 = vpop.f32.mrf.mxu0  ;;  %v1317_v15 = vpop.f32.mrf.mxu1  ;;  %624 = vrot.lane.b32.xlu1 %v1337_v2, %s1211_s0 }
  0xf4   :  { %v397_v43 = vsel %vm393_vm0, %v313_v34, 0.0  ;;  %v405_v54 = vsel %vm393_vm0, %v1317_v15, 0.0 }
  0xf5   :  { %v398_v46 = vadd.f32 %v397_v43, %v396_v42 }
  0xfa   :  { %v1341_v3 = vpop.f32.mrf.mxu2 }
  0xfb   :  { %v315_v48 = vpop.f32.mrf.mxu0  ;;  %v1327_v56 = vpop.f32.mrf.mxu1  ;;  %626 = vrot.lane.b32.xlu2 %v1341_v3, %s1211_s0 }
  0xfc   :  { %v399_v49 = vsel %vm393_vm0, %v315_v48, 0.0  ;;  %v407_v60 = vsel %vm393_vm0, %v1327_v56, 0.0 }
  0xfd   :  { %v400_v50 = vadd.f32 %v399_v49, %v398_v46 }
  0xff   :  { %v402_v52 = vadd.f32 %v401_v51, %v400_v50 }
 0x101   :  { %v404_v57 = vadd.f32 %v403_v53, %v402_v52 }
 0x102   :  { %v1345_v4 = vpop.f32.mrf.mxu2 }
 0x103   :  { %v406_v59 = vadd.f32 %v405_v54, %v404_v57  ;;  %630 = vrot.lane.b32.xlu2 %v1349_v7, %s1211_s0 }
 0x105   :  { %v408_v61 = vadd.f32 %v407_v60, %v406_v59 }
 0x107   :  { %409 = vadd.xlane.f32.xlu0 %v408_v61 }
 0x11b   :  { %622 = vrot.lane.b32.xlu0 %v1333_v63, %s1211_s0 }
 0x123   :  { %628 = vrot.lane.b32.xlu0 %v1345_v4, %s1211_s0 }
 0x17a   :  { %v410_v5 = vpop.xlane.xlu0 %409 }
 0x17b   :  { %v411_v6 = vrot.slane %v410_v5, 4 }
 0x17d   :  { %v412_v38 = vadd.f32 %v411_v6, %v410_v5 }
 0x17f   :  { %v413_v8 = vrot.slane %v412_v38, 2 }
 0x181   :  { %v414_v44 = vadd.f32 %v413_v8, %v412_v38  ;;  %v1370_v8 = vpop.f32.mrf.mxu3 }
 0x183   :  { %v415_v9 = vrot.slane %v414_v44, 1 }
 0x185   :  { %v416_v47 = vadd.f32 %v415_v9, %v414_v44 }
 0x187   :  { %975 = vpush %v416_v47 }
 0x1b8   :  { %s976_s1 = spop %975 }
 0x1b9   :  { %v418_v10 = vstv %s976_s1 }
 0x1ba   :  { %v419_v11 = vadd.f32 1e-05, %v418_v10 }
 0x1bc   :  { %1059 = vrcp.f32 %v419_v11 }
 0x1c2   :  { %v1060_v12 = vpop.eup %1059 }
 0x1c3   :  { %v422_v13 = vmul.f32 %v1060_v12, %v1309_v24  ;;  %v424_v14 = vmul.f32 %v1060_v12, %v315_v48  ;;  %v421_v21 = vmul.f32 %v1060_v12, %v1303_v18  ;;  %v423_v26 = vmul.f32 %v1060_v12, %v313_v34 }
 0x1c4   :  { %v425_v22 = vmul.f32 %v1060_v12, %v1305_v19  ;;  %v426_v23 = vmul.f32 %v1060_v12, %v1313_v30  ;;  %v427_v49 = vmul.f32 %v1060_v12, %v1317_v15  ;;  %v428_v50 = vmul.f32 %v1060_v12, %v1327_v56 }
 0x1c5   :  { %v432_v25 = vsel %vm393_vm0, %v422_v13, 0.0  ;;  %v541_v27 = vadd.f32 1e-05, %v422_v13  ;;  %v438_v28 = vsel %vm393_vm0, %v424_v14, 0.0  ;;  %v543_v29 = vadd.f32 1e-05, %v424_v14 }
 0x1c6   :  { %433 = vadd.xlane.f32.xlu1 %v432_v25  ;;  %439 = vadd.xlane.f32.xlu2 %v438_v28  ;;  %v429_v31 = vsel %vm393_vm0, %v421_v21, 0.0  ;;  %v540_v32 = vadd.f32 1e-05, %v421_v21  ;;  %v542_v24 = vadd.f32 1e-05, %v423_v26  ;;  %v435_v19 = vsel %vm393_vm0, %v423_v26, 0.0 }
 0x1c7   :  { %1061 = vlog2.f32 %v541_v27  ;;  %v453_v33 = vadd.f32 %v432_v25, %v429_v31  ;;  %430 = vadd.xlane.f32.xlu0 %v429_v31  ;;  %v544_v18 = vadd.f32 1e-05, %v425_v22  ;;  %v545_v30 = vadd.f32 1e-05, %v426_v23 }
 0x1c8   :  { %1063 = vlog2.f32 %v543_v29  ;;  %v441_v35 = vsel %vm393_vm0, %v425_v22, 0.0  ;;  %v444_v39 = vsel %vm393_vm0, %v426_v23, 0.0  ;;  %v447_v62 = vsel %vm393_vm0, %v427_v49, 0.0 }
 0x1c9   :  { %1065 = vlog2.f32 %v540_v32  ;;  %v454_v17 = vadd.f32 %v453_v33, %v435_v19  ;;  %v450_v5 = vsel %vm393_vm0, %v428_v50, 0.0  ;;  %v546_v32 = vadd.f32 1e-05, %v427_v49 }
 0x1ca   :  { %1067 = vlog2.f32 %v542_v24  ;;  %v547_v24 = vadd.f32 1e-05, %v428_v50 }
 0x1cb   :  { %v455_v34 = vadd.f32 %v454_v17, %v438_v28  ;;  %1069 = vlog2.f32 %v544_v18 }
 0x1cc   :  { %1071 = vlog2.f32 %v545_v30 }
 0x1cd   :  { %v1062_v20 = vpop.eup %1061  ;;  %v456_v40 = vadd.f32 %v455_v34, %v441_v35 }
 0x1ce   :  { %v1064_v36 = vpop.eup %1063  ;;  %v551_v37 = vmul.f32 0.6931472, %v1062_v20  ;;  %436 = vadd.xlane.f32.xlu1 %v435_v19  ;;  %442 = vadd.xlane.f32.xlu2 %v441_v35 }
 0x1cf   :  { %v1066_v16 = vpop.eup %1065  ;;  %445 = vadd.xlane.f32.xlu0 %v444_v39  ;;  %v555_v45 = vmul.f32 0.6931472, %v1064_v36  ;;  %v457_v58 = vadd.f32 %v456_v40, %v444_v39 }
 0x1d0   :  { %v1068_v41 = vpop.eup %1067  ;;  %v565_v43 = vmul.f32 %v551_v37, %v422_v13  ;;  %v549_v42 = vmul.f32 0.6931472, %v1066_v16 }
 0x1d1   :  { %v1070_v46 = vpop.eup %1069  ;;  %v553_v48 = vmul.f32 0.6931472, %v1068_v41  ;;  %v567_v54 = vmul.f32 %v555_v45, %v424_v14  ;;  %v458_v56 = vadd.f32 %v457_v58, %v447_v62  ;;  %v623_v45 = vpop.permute.xlu0 %622 }
 0x1d2   :  { %v1072_v51 = vpop.eup %1071  ;;  %v573_v52 = vsel %vm393_vm0, %v565_v43, 0.0  ;;  %v564_v53 = vmul.f32 %v549_v42, %v421_v21  ;;  %v557_v55 = vmul.f32 0.6931472, %v1070_v46  ;;  %v1388_v43 = vpop.permute.xlu2 %626 }
 0x1d3   :  { %v566_v57 = vmul.f32 %v553_v48, %v423_v26  ;;  %v559_v60 = vmul.f32 0.6931472, %v1072_v51  ;;  %v577_v9 = vsel %vm393_vm0, %v567_v54, 0.0  ;;  %v459_v11 = vadd.f32 %v458_v56, %v450_v5  ;;  %v1375_v26 = vpop.f32.mrf.mxu3  ;;  %v625_v42 = vpop.permute.xlu1 %624 }
 0x1d4   :  { %v572_v59 = vsel %vm393_vm0, %v564_v53, 0.0  ;;  %v568_v6 = vmul.f32 %v557_v55, %v425_v22 }
 0x1d5   :  { %v574_v61 = vadd.f32 %v573_v52, %v572_v59  ;;  %v575_v15 = vsel %vm393_vm0, %v566_v57, 0.0  ;;  %v569_v44 = vmul.f32 %v559_v60, %v426_v23  ;;  %v460_v21 = vrot.slane %v459_v11, 4 }
 0x1d6   :  { %448 = vadd.xlane.f32.xlu1 %v447_v62  ;;  %451 = vadd.xlane.f32.xlu2 %v450_v5  ;;  %v579_v10 = vsel %vm393_vm0, %v568_v6, 0.0 }
 0x1d7   :  { %v576_v38 = vadd.f32 %v575_v15, %v574_v61  ;;  %v581_v13 = vsel %vm393_vm0, %v569_v44, 0.0  ;;  %v461_v22 = vadd.f32 %v460_v21, %v459_v11 }
 0x1d9   :  { %v578_v47 = vadd.f32 %v577_v9, %v576_v38  ;;  %v462_v25 = vrot.slane %v461_v22, 2  ;;  %v1392_v48 = vpop.permute.xlu0 %628 }
 0x1da   :  { %v1390_v46 = vpop.permute.xlu2 %630 }
 0x1db   :  { %v580_v12 = vadd.f32 %v579_v10, %v578_v47  ;;  %v463_v27 = vadd.f32 %v462_v25, %v461_v22  ;;  %v1379_v23 = vpop.f32.mrf.mxu3 }
 0x1dd   :  { %v582_v14 = vadd.f32 %v581_v13, %v580_v12  ;;  %v464_v28 = vrot.slane %v463_v27, 1 }
 0x1df   :  { %v465_v29 = vadd.f32 %v464_v28, %v463_v27 }
 0x1e1   :  { %v524_v31 = vadd.f32 1e-05, %v465_v29 }
 0x1e3   :  { %634 = vrot.lane.b32.xlu0 %v1375_v26, %s1211_s0  ;;  %1073 = vlog2.f32 %v524_v31 }
 0x1e4   :  { %1075 = vlog2.f32 %v546_v32 }
 0x1e5   :  { %1077 = vlog2.f32 %v547_v24 }
 0x1e9   :  { %v1074_v33 = vpop.eup %1073 }
 0x1ea   :  { %v526_v18 = vmul.f32 0.6931472, %v1074_v33  ;;  %v1076_v19 = vpop.eup %1075 }
 0x1eb   :  { %v561_v17 = vmul.f32 0.6931472, %v1076_v19  ;;  %v1078_v34 = vpop.eup %1077 }
 0x1ec   :  { %v527_v30 = vmul.f32 %v526_v18, %v465_v29  ;;  %v563_v35 = vmul.f32 0.6931472, %v1078_v34 }
 0x1ed   :  { %v570_v36 = vmul.f32 %v561_v17, %v427_v49 }
 0x1ee   :  { %636 = vrot.lane.b32.xlu2 %v1379_v23, %s1211_s0  ;;  %v529_v20 = vsel %vm528_vm1, %v527_v30, 0.0  ;;  %v571_v37 = vmul.f32 %v563_v35, %v428_v50  ;;  %v647_v35 = vsel %vm393_vm0, %v625_v42, 0.0 }
 0x1ef   :  { %632 = vrot.lane.b32.xlu1 %v1370_v8, %s1211_s0  ;;  %v583_v39 = vsel %vm393_vm0, %v570_v36, 0.0 }
 0x1f0   :  { %v584_v16 = vadd.f32 %v583_v39, %v582_v14  ;;  %v585_v40 = vsel %vm393_vm0, %v571_v37, 0.0 }
 0x1f2   :  { %v586_v41 = vadd.f32 %v585_v40, %v584_v16 }
 0x20d   :  { %530 = vadd.xlane.f32.xlu0 %v529_v20  ;;  %v646_v20 = vsel %vm393_vm0, %v623_v45, 0.0 }
 0x217   :  { %587 = vadd.xlane.f32.xlu2 %v586_v41 }
 0x239   :  { %v434_v51 = vpop.xlane.xlu1 %433  ;;  %v440_v52 = vpop.xlane.xlu2 %439 }
 0x23a   :  { %v467_v49 = vadd.f32 1e-05, %v434_v51  ;;  %v431_v53 = vpop.xlane.xlu0 %430  ;;  %v469_v55 = vadd.f32 1e-05, %v440_v52 }
 0x23b   :  { %v466_v50 = vadd.f32 1e-05, %v431_v53 }
 0x23c   :  { %1079 = vlog2.f32 %v467_v49 }
 0x23d   :  { %1081 = vlog2.f32 %v466_v50 }
 0x23e   :  { %1083 = vlog2.f32 %v469_v55 }
 0x241   :  { %v437_v57 = vpop.xlane.xlu1 %436  ;;  %v443_v58 = vpop.xlane.xlu2 %442 }
 0x242   :  { %v1080_v54 = vpop.eup %1079  ;;  %v468_v59 = vadd.f32 1e-05, %v437_v57  ;;  %v470_v60 = vadd.f32 1e-05, %v443_v58  ;;  %v446_v61 = vpop.xlane.xlu0 %445 }
 0x243   :  { %v477_v62 = vmul.f32 0.6931472, %v1080_v54  ;;  %v471_v5 = vadd.f32 1e-05, %v446_v61  ;;  %v1082_v15 = vpop.eup %1081  ;;  %v651_v54 = vsel %vm393_vm0, %v1392_v48, 0.0 }
 0x244   :  { %1085 = vlog2.f32 %v468_v59  ;;  %v475_v6 = vmul.f32 0.6931472, %v1082_v15  ;;  %v1084_v56 = vpop.eup %1083 }
 0x245   :  { %1087 = vlog2.f32 %v470_v60  ;;  %v491_v38 = vmul.f32 %v477_v62, %v434_v51  ;;  %v481_v9 = vmul.f32 0.6931472, %v1084_v56  ;;  %v648_v51 = vadd.f32 %v647_v35, %v646_v20 }
 0x246   :  { %1089 = vlog2.f32 %v471_v5  ;;  %v490_v44 = vmul.f32 %v475_v6, %v431_v53  ;;  %v649_v53 = vsel %vm393_vm0, %v1388_v43, 0.0 }
 0x247   :  { %v500_v21 = vsel %vm498_vm2, %v491_v38, 0.0  ;;  %v493_v29 = vmul.f32 %v481_v9, %v440_v52  ;;  %v650_v42 = vadd.f32 %v649_v53, %v648_v51 }
 0x248   :  { %v499_v22 = vsel %vm498_vm2, %v490_v44, 0.0 }
 0x249   :  { %v449_v47 = vpop.xlane.xlu1 %448  ;;  %v452_v10 = vpop.xlane.xlu2 %451  ;;  %v501_v24 = vadd.f32 %v500_v21, %v499_v22  ;;  %v504_v30 = vsel %vm498_vm2, %v493_v29, 0.0  ;;  %v652_v60 = vadd.f32 %v651_v54, %v650_v42 }
 0x24a   :  { %v1086_v11 = vpop.eup %1085  ;;  %v472_v12 = vadd.f32 1e-05, %v449_v47  ;;  %v473_v13 = vadd.f32 1e-05, %v452_v10 }
 0x24b   :  { %v1088_v14 = vpop.eup %1087  ;;  %v479_v25 = vmul.f32 0.6931472, %v1086_v11 }
 0x24c   :  { %v1090_v27 = vpop.eup %1089  ;;  %v483_v28 = vmul.f32 0.6931472, %v1088_v14  ;;  %1091 = vlog2.f32 %v472_v12 }
 0x24d   :  { %v492_v31 = vmul.f32 %v479_v25, %v437_v57  ;;  %v485_v32 = vmul.f32 0.6931472, %v1090_v27  ;;  %1093 = vlog2.f32 %v473_v13 }
 0x24e   :  { %v494_v18 = vmul.f32 %v483_v28, %v443_v58 }
 0x24f   :  { %v502_v33 = vsel %vm498_vm2, %v492_v31, 0.0  ;;  %v495_v17 = vmul.f32 %v485_v32, %v446_v61  ;;  %v653_v61 = vsel %vm393_vm0, %v1390_v46, 0.0 }
 0x250   :  { %v503_v19 = vadd.f32 %v502_v33, %v501_v24  ;;  %v506_v39 = vsel %vm498_vm2, %v494_v18, 0.0  ;;  %v654_v5 = vadd.f32 %v653_v61, %v652_v60 }
 0x251   :  { %v508_v52 = vsel %vm498_vm2, %v495_v17, 0.0  ;;  %v637_v56 = vpop.permute.xlu2 %636 }
 0x252   :  { %v1092_v34 = vpop.eup %1091  ;;  %v505_v36 = vadd.f32 %v504_v30, %v503_v19  ;;  %v659_v9 = vsel %vm393_vm0, %v637_v56, 0.0 }
 0x253   :  { %v1094_v37 = vpop.eup %1093  ;;  %v487_v16 = vmul.f32 0.6931472, %v1092_v34 }
 0x254   :  { %v507_v40 = vadd.f32 %v506_v39, %v505_v36  ;;  %v489_v41 = vmul.f32 0.6931472, %v1094_v37 }
 0x255   :  { %v496_v49 = vmul.f32 %v487_v16, %v449_v47  ;;  %v635_v62 = vpop.permute.xlu0 %634 }
 0x256   :  { %v509_v50 = vadd.f32 %v508_v52, %v507_v40  ;;  %v497_v55 = vmul.f32 %v489_v41, %v452_v10  ;;  %v657_v6 = vsel %vm393_vm0, %v635_v62, 0.0  ;;  %v1414_v40 = vand.u32 127, %v62_v0 }
 0x257   :  { %v510_v45 = vsel %vm498_vm2, %v496_v49, 0.0 }
 0x258   :  { %v511_v57 = vadd.f32 %v510_v45, %v509_v50  ;;  %v512_v58 = vsel %vm498_vm2, %v497_v55, 0.0  ;;  %vm598_vm3 = vcmp.eq.s32.totalorder %v1414_v40, 1  ;;  %vm597_vm4 = vcmp.eq.s32.totalorder %v1414_v40, 0 }
 0x25a   :  { %v513_v59 = vadd.f32 %v512_v58, %v511_v57 }
 0x25c   :  { %514 = vadd.xlane.f32.xlu1 %v513_v59 }
 0x261   :  { %v633_v43 = vpop.permute.xlu1 %632 }
 0x262   :  { %v655_v15 = vsel %vm393_vm0, %v633_v43, 0.0 }
 0x263   :  { %v656_v38 = vadd.f32 %v655_v15, %v654_v5 }
 0x265   :  { %v658_v44 = vadd.f32 %v657_v6, %v656_v38 }
 0x267   :  { %v660_v47 = vadd.f32 %v659_v9, %v658_v44 }
 0x269   :  { %661 = vadd.xlane.f32.xlu1 %v660_v47 }
 0x280   :  { %v531_v48 = vpop.xlane.xlu0 %530 }
 0x281   :  { %v532_v11 = vrot.slane %v531_v48, 4 }
 0x283   :  { %v533_v13 = vadd.f32 %v532_v11, %v531_v48 }
 0x285   :  { %v534_v14 = vrot.slane %v533_v13, 2 }
 0x287   :  { %v535_v28 = vadd.f32 %v534_v14, %v533_v13 }
 0x289   :  { %v536_v24 = vrot.slane %v535_v28, 1 }
 0x28a   :  { %v588_v10 = vpop.xlane.xlu2 %587 }
 0x28b   :  { %v589_v12 = vrot.slane %v588_v10, 4  ;;  %v537_v30 = vadd.f32 %v536_v24, %v535_v28 }
 0x28d   :  { %v590_v46 = vadd.f32 %v589_v12, %v588_v10 }
 0x28f   :  { %v591_v22 = vrot.slane %v590_v46, 2 }
 0x291   :  { %v592_v31 = vadd.f32 %v591_v22, %v590_v46 }
 0x293   :  { %v593_v18 = vrot.slane %v592_v31, 1 }
 0x295   :  { %v594_v34 = vadd.f32 %v593_v18, %v592_v31 }
 0x2cf   :  { %v515_v21 = vpop.xlane.xlu1 %514 }
 0x2d0   :  { %v516_v25 = vrot.slane %v515_v21, 4 }
 0x2d2   :  { %v517_v27 = vadd.f32 %v516_v25, %v515_v21 }
 0x2d4   :  { %v518_v29 = vrot.slane %v517_v27, 2 }
 0x2d6   :  { %v519_v32 = vadd.f32 %v518_v29, %v517_v27 }
 0x2d8   :  { %v520_v33 = vrot.slane %v519_v32, 1 }
 0x2da   :  { %v521_v19 = vadd.f32 %v520_v33, %v519_v32 }
 0x2dc   :  { %977 = vpush %v521_v19  ;;  %v662_v17 = vpop.xlane.xlu1 %661 }
 0x2dd   :  { %v663_v20 = vrot.slane %v662_v17, 4  ;;  %979 = vpush %v537_v30 }
 0x2de   :  { %981 = vpush %v594_v34 }
 0x2df   :  { %v664_v35 = vadd.f32 %v663_v20, %v662_v17 }
 0x2e1   :  { %v665_v36 = vrot.slane %v664_v35, 2 }
 0x2e3   :  { %v666_v37 = vadd.f32 %v665_v36, %v664_v35 }
 0x2e5   :  { %v667_v39 = vrot.slane %v666_v37, 1 }
 0x2e7   :  { %v668_v16 = vadd.f32 %v667_v39, %v666_v37 }
 0x2e9   :  { %983 = vpush %v668_v16 }
 0x30d   :  { %s978_s19 = spop %977 }
 0x30e   :  { %s523_s20 = ssub.f32 0.0, %s978_s19  ;;  %s980_s21 = spop %979 }
 0x30f   :  { %s539_s22 = ssub.f32 0.0, %s980_s21  ;;  %s982_s23 = spop %981 }
 0x310   :  { %s596_s24 = ssub.f32 0.0, %s982_s23  ;;  %v602_v41 = vstv %s523_s20 }
 0x311   :  { %v599_v51 = vstv %s539_s22 }
 0x312   :  { %v600_v52 = vstv %s596_s24 }
 0x313   :  { %v601_v49 = vsel %vm598_vm3, %v599_v51, %v600_v52 }
 0x314   :  { %v1422_v0 = vsel %vm597_vm4, %v602_v41, %v601_v49 }
 0x31a   :  { %s984_s25 = spop %983 }
 0x31b   :  { %v670_v53 = vstv %s984_s25 }
 0x31c   :  { %v671_v50 = vadd.f32 1e-05, %v670_v53 }
 0x31e   :  { %1095 = vrcp.f32 %v671_v50 }
 0x324   :  { %v1096_v55 = vpop.eup %1095 }
 0x325   :  { %v675_v45 = vmul.f32 %v1096_v55, %v1341_v3  ;;  %v674_v57 = vmul.f32 %v1096_v55, %v1337_v2  ;;  %v673_v42 = vmul.f32 %v1096_v55, %v1333_v63  ;;  %v676_v58 = vmul.f32 %v1096_v55, %v1345_v4 }
 0x326   :  { %v678_v61 = vmul.f32 %v1096_v55, %v1370_v8  ;;  %v677_v63 = vmul.f32 %v1096_v55, %v1349_v7  ;;  %v1438_v6 = vmul.f32 %v1096_v55, %v1375_v26  ;;  %v1445_v7 = vmul.f32 %v1096_v55, %v1379_v23 }
 0x327   :  { %693 = vrot.lane.b32.xlu1 %v675_v45, %s1211_s0  ;;  %691 = vrot.lane.b32.xlu2 %v674_v57, %s1211_s0  ;;  %v739_v54 = vsel %vm737_vm5, %v674_v57, 0.0  ;;  %v738_v59 = vsel %vm737_vm5, %v673_v42, 0.0  ;;  %v837_v60 = vadd.f32 1e-05, %v675_v45  ;;  %v741_v2 = vsel %vm737_vm5, %v675_v45, 0.0 }
 0x328   :  { %689 = vrot.lane.b32.xlu0 %v673_v42, %s1211_s0  ;;  %v740_v3 = vadd.f32 %v739_v54, %v738_v59  ;;  %v743_v62 = vsel %vm737_vm5, %v676_v58, 0.0  ;;  %v840_v5 = vadd.f32 1e-05, %v678_v61  ;;  %v835_v15 = vadd.f32 1e-05, %v673_v42 }
 0x329   :  { %1097 = vlog2.f32 %v837_v60  ;;  %v745_v56 = vsel %vm737_vm5, %v677_v63, 0.0  ;;  %v836_v8 = vadd.f32 1e-05, %v674_v57  ;;  %v747_v9 = vsel %vm737_vm5, %v678_v61, 0.0 }
 0x32a   :  { %v742_v4 = vadd.f32 %v741_v2, %v740_v3  ;;  %1099 = vlog2.f32 %v840_v5  ;;  %v749_v48 = vsel %vm737_vm5, %v1438_v6, 0.0  ;;  %v751_v11 = vsel %vm737_vm5, %v1445_v7, 0.0 }
 0x32b   :  { %1101 = vlog2.f32 %v835_v15  ;;  %v839_v12 = vadd.f32 1e-05, %v677_v63  ;;  %v838_v14 = vadd.f32 1e-05, %v676_v58  ;;  %v842_v5 = vadd.f32 1e-05, %v1445_v7 }
 0x32c   :  { %v744_v43 = vadd.f32 %v743_v62, %v742_v4  ;;  %1103 = vlog2.f32 %v836_v8  ;;  %v841_v62 = vadd.f32 1e-05, %v1438_v6 }
 0x32d   :  { %1105 = vlog2.f32 %v839_v12 }
 0x32e   :  { %v746_v38 = vadd.f32 %v745_v56, %v744_v43  ;;  %1107 = vlog2.f32 %v838_v14 }
 0x32f   :  { %v1098_v44 = vpop.eup %1097  ;;  %701 = vrot.lane.b32.xlu1 %v1438_v6, %s1211_s0  ;;  %697 = vrot.lane.b32.xlu2 %v677_v63, %s1211_s0 }
 0x330   :  { %695 = vrot.lane.b32.xlu0 %v676_v58, %s1211_s0  ;;  %v748_v26 = vadd.f32 %v747_v9, %v746_v38  ;;  %v848_v47 = vmul.f32 0.6931472, %v1098_v44  ;;  %v1100_v23 = vpop.eup %1099 }
 0x331   :  { %v1102_v21 = vpop.eup %1101  ;;  %v854_v25 = vmul.f32 0.6931472, %v1100_v23 }
 0x332   :  { %v750_v10 = vadd.f32 %v749_v48, %v748_v26  ;;  %v861_v46 = vmul.f32 %v848_v47, %v675_v45  ;;  %v1104_v22 = vpop.eup %1103  ;;  %v844_v27 = vmul.f32 0.6931472, %v1102_v21 }
 0x333   :  { %v846_v28 = vmul.f32 0.6931472, %v1104_v22  ;;  %v864_v29 = vmul.f32 %v854_v25, %v678_v61  ;;  %v1106_v32 = vpop.eup %1105 }
 0x334   :  { %v752_v13 = vadd.f32 %v751_v11, %v750_v10  ;;  %v859_v31 = vmul.f32 %v844_v27, %v673_v42  ;;  %v1108_v33 = vpop.eup %1107  ;;  %v852_v18 = vmul.f32 0.6931472, %v1106_v32 }
 0x335   :  { %v860_v24 = vmul.f32 %v846_v28, %v674_v57  ;;  %v850_v19 = vmul.f32 0.6931472, %v1108_v33 }
 0x336   :  { %v863_v30 = vmul.f32 %v852_v18, %v677_v63  ;;  %v753_v35 = vrot.slane %v752_v13, 4 }
 0x337   :  { %879 = vrot.lane.b32.xlu1 %v861_v46, %s1211_s0  ;;  %703 = vrot.lane.b32.xlu2 %v1445_v7, %s1211_s0  ;;  %v862_v17 = vmul.f32 %v850_v19, %v676_v58 }
 0x338   :  { %699 = vrot.lane.b32.xlu0 %v678_v61, %s1211_s0  ;;  %v754_v36 = vadd.f32 %v753_v35, %v752_v13 }
 0x33a   :  { %v755_v16 = vrot.slane %v754_v36, 2 }
 0x33c   :  { %v756_v41 = vadd.f32 %v755_v16, %v754_v36 }
 0x33e   :  { %v757_v49 = vrot.slane %v756_v41, 1 }
 0x33f   :  { %885 = vrot.lane.b32.xlu1 %v864_v29, %s1211_s0  ;;  %875 = vrot.lane.b32.xlu2 %v859_v31, %s1211_s0 }
 0x340   :  { %877 = vrot.lane.b32.xlu0 %v860_v24, %s1211_s0  ;;  %v758_v53 = vadd.f32 %v757_v49, %v756_v41 }
 0x342   :  { %v816_v57 = vadd.f32 1e-05, %v758_v53 }
 0x344   :  { %1109 = vlog2.f32 %v816_v57 }
 0x345   :  { %1111 = vlog2.f32 %v841_v62 }
 0x346   :  { %1113 = vlog2.f32 %v842_v5 }
 0x347   :  { %883 = vrot.lane.b32.xlu2 %v863_v30, %s1211_s0 }
 0x348   :  { %881 = vrot.lane.b32.xlu0 %v862_v17, %s1211_s0 }
 0x34a   :  { %v1110_v59 = vpop.eup %1109 }
 0x34b   :  { %v818_v60 = vmul.f32 0.6931472, %v1110_v59  ;;  %v1112_v43 = vpop.eup %1111 }
 0x34c   :  { %v856_v15 = vmul.f32 0.6931472, %v1112_v43  ;;  %v1114_v56 = vpop.eup %1113 }
 0x34d   :  { %v819_v4 = vmul.f32 %v818_v60, %v758_v53  ;;  %v858_v38 = vmul.f32 0.6931472, %v1114_v56 }
 0x34e   :  { %v865_v8 = vmul.f32 %v856_v15, %v1438_v6 }
 0x34f   :  { %v866_v44 = vmul.f32 %v858_v38, %v1445_v7 }
 0x381   :  { %v692_v34 = vpop.permute.xlu2 %691 }
 0x382   :  { %v716_v20 = vsel %vm393_vm0, %v692_v34, 0.0 }
 0x383   :  { %717 = vadd.xlane.f32.xlu1 %v716_v20 }
 0x389   :  { %v698_v37 = vpop.permute.xlu2 %697 }
 0x38a   :  { %v725_v39 = vsel %vm393_vm0, %v698_v37, 0.0 }
 0x38b   :  { %726 = vadd.xlane.f32.xlu1 %v725_v39 }
 0x391   :  { %v704_v51 = vpop.permute.xlu2 %703 }
 0x392   :  { %v734_v52 = vsel %vm393_vm0, %v704_v51, 0.0 }
 0x393   :  { %735 = vadd.xlane.f32.xlu1 %v734_v52 }
 0x399   :  { %v694_v50 = vpop.permute.xlu1 %693  ;;  %v876_v26 = vpop.permute.xlu2 %875 }
 0x39a   :  { %v690_v55 = vpop.permute.xlu0 %689  ;;  %v719_v45 = vsel %vm393_vm0, %v694_v50, 0.0  ;;  %v899_v50 = vsel %vm393_vm0, %v876_v26, 0.0 }
 0x39b   :  { %v713_v42 = vsel %vm393_vm0, %v690_v55, 0.0  ;;  %720 = vadd.xlane.f32.xlu2 %v719_v45 }
 0x39c   :  { %714 = vadd.xlane.f32.xlu0 %v713_v42 }
 0x3a1   :  { %v702_v61 = vpop.permute.xlu1 %701  ;;  %v1479_v11 = vpop.permute.xlu2 %883 }
 0x3a2   :  { %v696_v58 = vpop.permute.xlu0 %695  ;;  %v731_v2 = vsel %vm393_vm0, %v702_v61, 0.0 }
 0x3a3   :  { %v722_v54 = vsel %vm393_vm0, %v696_v58, 0.0 }
 0x3a4   :  { %723 = vadd.xlane.f32.xlu0 %v722_v54 }
 0x3a9   :  { %v880_v9 = vpop.permute.xlu1 %879 }
 0x3aa   :  { %v700_v3 = vpop.permute.xlu0 %699  ;;  %v902_v60 = vsel %vm393_vm0, %v880_v9, 0.0 }
 0x3ab   :  { %v728_v63 = vsel %vm393_vm0, %v700_v3, 0.0 }
 0x3ac   :  { %732 = vadd.xlane.f32.xlu0 %v731_v2  ;;  %729 = vadd.xlane.f32.xlu2 %v728_v63 }
 0x3ad   :  { %821 = vrot.lane.b32.xlu1 %v819_v4, %s1211_s0 }
 0x3b1   :  { %v1477_v47 = vpop.permute.xlu1 %885 }
 0x3b2   :  { %v878_v48 = vpop.permute.xlu0 %877 }
 0x3b3   :  { %v900_v41 = vsel %vm393_vm0, %v878_v48, 0.0  ;;  %v906_v48 = vsel %vm393_vm0, %v1479_v11, 0.0 }
 0x3b4   :  { %v901_v57 = vadd.f32 %v900_v41, %v899_v50 }
 0x3b6   :  { %v903_v63 = vadd.f32 %v902_v60, %v901_v57 }
 0x3ba   :  { %v882_v12 = vpop.permute.xlu0 %881 }
 0x3bb   :  { %v904_v61 = vsel %vm393_vm0, %v882_v12, 0.0 }
 0x3bc   :  { %v905_v15 = vadd.f32 %v904_v61, %v903_v63 }
 0x3c0   :  { %887 = vrot.lane.b32.xlu0 %v865_v8, %s1211_s0 }
 0x3c4   :  { %889 = vrot.lane.b32.xlu2 %v866_v44, %s1211_s0 }
 0x3f6   :  { %v718_v10 = vpop.xlane.xlu1 %717 }
 0x3f7   :  { %v760_v13 = vadd.f32 1e-05, %v718_v10 }
 0x3f9   :  { %1115 = vlog2.f32 %v760_v13 }
 0x3fe   :  { %v727_v23 = vpop.xlane.xlu1 %726 }
 0x3ff   :  { %v1116_v7 = vpop.eup %1115  ;;  %v763_v22 = vadd.f32 1e-05, %v727_v23 }
 0x400   :  { %v770_v32 = vmul.f32 0.6931472, %v1116_v7 }
 0x402   :  { %v784_v19 = vmul.f32 %v770_v32, %v718_v10  ;;  %v907_v10 = vadd.f32 %v906_v48, %v905_v15 }
 0x404   :  { %v792_v49 = vsel %vm498_vm2, %v784_v19, 0.0 }
 0x406   :  { %v736_v28 = vpop.xlane.xlu1 %735 }
 0x407   :  { %v766_v18 = vadd.f32 1e-05, %v736_v28 }
 0x40e   :  { %v721_v46 = vpop.xlane.xlu2 %720 }
 0x40f   :  { %v715_v6 = vpop.xlane.xlu0 %714  ;;  %v761_v21 = vadd.f32 1e-05, %v721_v46 }
 0x410   :  { %v759_v14 = vadd.f32 1e-05, %v715_v6 }
 0x412   :  { %1117 = vlog2.f32 %v759_v14 }
 0x413   :  { %1119 = vlog2.f32 %v761_v21 }
 0x417   :  { %v724_v25 = vpop.xlane.xlu0 %723 }
 0x418   :  { %v1118_v27 = vpop.eup %1117  ;;  %v762_v29 = vadd.f32 1e-05, %v724_v25 }
 0x419   :  { %v768_v31 = vmul.f32 0.6931472, %v1118_v27  ;;  %v1120_v24 = vpop.eup %1119 }
 0x41a   :  { %1121 = vlog2.f32 %v762_v29  ;;  %v772_v30 = vmul.f32 0.6931472, %v1120_v24 }
 0x41b   :  { %1123 = vlog2.f32 %v763_v22  ;;  %v783_v33 = vmul.f32 %v768_v31, %v715_v6  ;;  %v908_v6 = vsel %vm393_vm0, %v1477_v47, 0.0 }
 0x41c   :  { %1125 = vlog2.f32 %v766_v18  ;;  %v785_v53 = vmul.f32 %v772_v30, %v721_v46  ;;  %v909_v22 = vadd.f32 %v908_v6, %v907_v10 }
 0x41d   :  { %v791_v35 = vsel %vm498_vm2, %v783_v33, 0.0 }
 0x41e   :  { %v793_v55 = vadd.f32 %v792_v49, %v791_v35  ;;  %v794_v58 = vsel %vm498_vm2, %v785_v53, 0.0 }
 0x41f   :  { %v733_v17 = vpop.xlane.xlu0 %732  ;;  %v730_v34 = vpop.xlane.xlu2 %729 }
 0x420   :  { %v1122_v20 = vpop.eup %1121  ;;  %v765_v36 = vadd.f32 1e-05, %v733_v17  ;;  %v764_v37 = vadd.f32 1e-05, %v730_v34  ;;  %v822_v39 = vpop.permute.xlu1 %821  ;;  %v795_v3 = vadd.f32 %v794_v58, %v793_v55  ;;  %v605_v58 = vsel %vm604_vm6, %v1422_v0, 0.0 }
 0x421   :  { %v1124_v16 = vpop.eup %1123  ;;  %v774_v51 = vmul.f32 0.6931472, %v1122_v20  ;;  %v824_v52 = vsel %vm528_vm1, %v822_v39, 0.0 }
 0x422   :  { %1127 = vlog2.f32 %v765_v36  ;;  %825 = vadd.xlane.f32.xlu2 %v824_v52  ;;  %v776_v42 = vmul.f32 0.6931472, %v1124_v16  ;;  %v1126_v59 = vpop.eup %1125 }
 0x423   :  { %v786_v45 = vmul.f32 %v774_v51, %v724_v25  ;;  %1129 = vlog2.f32 %v764_v37  ;;  %v782_v56 = vmul.f32 0.6931472, %v1126_v59 }
 0x424   :  { %v787_v4 = vmul.f32 %v776_v42, %v727_v23 }
 0x425   :  { %v796_v54 = vsel %vm498_vm2, %v786_v45, 0.0  ;;  %v790_v12 = vmul.f32 %v782_v56, %v736_v28 }
 0x426   :  { %v797_v5 = vadd.f32 %v796_v54, %v795_v3  ;;  %v798_v38 = vsel %vm498_vm2, %v787_v4, 0.0 }
 0x427   :  { %v890_v21 = vpop.permute.xlu2 %889  ;;  %v804_v25 = vsel %vm498_vm2, %v790_v12, 0.0 }
 0x428   :  { %v1128_v2 = vpop.eup %1127  ;;  %v799_v9 = vadd.f32 %v798_v38, %v797_v5  ;;  %v912_v28 = vsel %vm393_vm0, %v890_v21, 0.0 }
 0x429   :  { %v1130_v62 = vpop.eup %1129  ;;  %v780_v43 = vmul.f32 0.6931472, %v1128_v2 }
 0x42a   :  { %v778_v8 = vmul.f32 0.6931472, %v1130_v62 }
 0x42b   :  { %v789_v44 = vmul.f32 %v780_v43, %v733_v17 }
 0x42c   :  { %v788_v26 = vmul.f32 %v778_v8, %v730_v34 }
 0x42d   :  { %v802_v23 = vsel %vm498_vm2, %v789_v44, 0.0 }
 0x42e   :  { %v800_v13 = vsel %vm498_vm2, %v788_v26, 0.0 }
 0x42f   :  { %v801_v46 = vadd.f32 %v800_v13, %v799_v9 }
 0x431   :  { %v803_v14 = vadd.f32 %v802_v23, %v801_v46 }
 0x432   :  { %v888_v7 = vpop.permute.xlu0 %887 }
 0x433   :  { %v910_v27 = vsel %vm393_vm0, %v888_v7, 0.0  ;;  %v805_v11 = vadd.f32 %v804_v25, %v803_v14 }
 0x434   :  { %v911_v29 = vadd.f32 %v910_v27, %v909_v22 }
 0x435   :  { %806 = vadd.xlane.f32.xlu0 %v805_v11 }
 0x436   :  { %v913_v31 = vadd.f32 %v912_v28, %v911_v29 }
 0x438   :  { %914 = vadd.xlane.f32.xlu1 %v913_v31 }
 0x495   :  { %v826_v32 = vpop.xlane.xlu2 %825 }
 0x496   :  { %v827_v24 = vrot.slane %v826_v32, 4 }
 0x498   :  { %v828_v33 = vadd.f32 %v827_v24, %v826_v32 }
 0x49a   :  { %v829_v18 = vrot.slane %v828_v33, 2 }
 0x49c   :  { %v830_v34 = vadd.f32 %v829_v18, %v828_v33 }
 0x49e   :  { %v831_v16 = vrot.slane %v830_v34, 1 }
 0x4a0   :  { %v832_v49 = vadd.f32 %v831_v16, %v830_v34 }
 0x4a8   :  { %v807_v47 = vpop.xlane.xlu0 %806 }
 0x4a9   :  { %v808_v19 = vrot.slane %v807_v47, 4 }
 0x4ab   :  { %v809_v30 = vadd.f32 %v808_v19, %v807_v47  ;;  %v915_v17 = vpop.xlane.xlu1 %914 }
 0x4ac   :  { %v916_v20 = vrot.slane %v915_v17, 4 }
 0x4ad   :  { %v810_v35 = vrot.slane %v809_v30, 2 }
 0x4ae   :  { %v917_v36 = vadd.f32 %v916_v20, %v915_v17 }
 0x4af   :  { %v811_v37 = vadd.f32 %v810_v35, %v809_v30 }
 0x4b0   :  { %v918_v39 = vrot.slane %v917_v36, 2 }
 0x4b1   :  { %v812_v41 = vrot.slane %v811_v37, 1 }
 0x4b2   :  { %v919_v51 = vadd.f32 %v918_v39, %v917_v36 }
 0x4b3   :  { %v813_v52 = vadd.f32 %v812_v41, %v811_v37 }
 0x4b4   :  { %v920_v53 = vrot.slane %v919_v51, 1 }
 0x4b5   :  { %985 = vpush %v813_v52 }
 0x4b6   :  { %987 = vpush %v832_v49  ;;  %v921_v50 = vadd.f32 %v920_v53, %v919_v51 }
 0x4b8   :  { %989 = vpush %v921_v50 }
 0x4e6   :  { %s986_s26 = spop %985 }
 0x4e7   :  { %s988_s27 = spop %987  ;;  %s815_s29 = ssub.f32 0.0, %s986_s26 }
 0x4e8   :  { %s834_s28 = ssub.f32 0.0, %s988_s27 }
 0x4e9   :  { %s990_s30 = spop %989  ;;  %v927_v57 = vstv %s815_s29 }
 0x4ea   :  { %s923_s3 = ssub.f32 0.0, %s990_s30  ;;  %v924_v55 = vstv %s834_s28 }
 0x4ec   :  { %v925_v45 = vstv %s923_s3 }
 0x4ed   :  { %v926_v42 = vsel %vm598_vm3, %v924_v55, %v925_v45 }
 0x4ee   :  { %v928_v54 = vsel %vm597_vm4, %v927_v57, %v926_v42 }
 0x4ef   :  { %v930_v59 = vsel %vm929_vm7, %v928_v54, %v605_v58 }
 0x4f0   :  { %932 = vst.msk [vmem:[#allocation8] sm:$0x3] %vm931_vm8, %v930_v59 }
 0x4f1   :  { %943 = dma.vmem_to_hbm [thread:$0]  %s939_s5, 32, %s941_s8, [#allocation5]  }
 0x4f2   :  { %1207 = dma.done.wait [#allocation5], 32  }
 0x4f3   :  { %1208 = vsyncadd [#allocation5], 4294967264 }
 0x4f4   :  { %948 = vsyncpa [#allocation4], 1 }
 0x4f5   :  { %949 = vsyncpa [#allocation7], 1 }
 0x4f6   :  { %950 = vsyncpa [#allocation5], 1 }

</bundles_post_ra>
